<compile_context>
chip_gen: v7x
topology: tpu7x:2x2x1
jax: 0.10.0
libtpu: 0.0.40
codegen_flags: <defaults>
</compile_context>

<pallas_src>
import functools

import jax
import jax.numpy as jnp
from jax.experimental import pallas as pl
from jax.experimental.pallas import tpu as pltpu

# ---------------- model hyper-params ----------------------------------------
N_NODES   = 256        # rows (nodes) per forward; tiled at 128 over the grid
IN_FEAT   = 32         # in_feat (must equal out_feat for the module's fc)
OUT_FEAT  = 32
NUM_HEADS = 4
HEAD_DIM  = OUT_FEAT // NUM_HEADS
TILE_N    = 128        # rows per grid step (2 parallel steps at N=256 -> v7x
                       # dual-TC friendly; near-free on v5e/v6e)


def _mha_kernel(spatial_ref, feat_ref, w_ref, u_ref, fcw_ref, fcb_ref,
                out_ref):
    """One row-tile of the full forward pass (no VMEM scratch needed).

    spatial_ref : [TN, F]      f32
    feat_ref    : [TN, F]      f32
    w_ref       : [F, H*hd]    f32   (all heads' w_omega, lane-packed)
    u_ref       : [H*hd, H]    f32   (block-diagonal u_omega)
    fcw_ref     : [H*F, OUT]   f32   (fc weight, pre-transposed)
    fcb_ref     : [1, OUT]     f32
    out_ref     : [TN, OUT]    f32
    """
    spatial = spatial_ref[...]                                      # [TN, F]
    feat = feat_ref[...]                                            # [TN, F]
    w = w_ref[...]                                                  # [F, H*hd]

    # --- attention scores --------------------------------------------------
    # Two small dots instead of an axis-0 concat copy; then the identity
    #   vu_s - vu_f = (tanh(s@W) - tanh(f@W)) @ U
    v_s = jnp.tanh(jnp.dot(spatial, w, preferred_element_type=jnp.float32))
    v_f = jnp.tanh(jnp.dot(feat, w, preferred_element_type=jnp.float32))
    d_u = jnp.dot(v_s - v_f, u_ref[...],
                  preferred_element_type=jnp.float32)               # [TN, H]

    # 2-way softmax over {spatial, feat} == sigmoid of the score difference.
    # (The +1e-6 of the reference shifts both logits and cancels exactly.)
    a_s = jax.nn.sigmoid(d_u)                                       # [TN, H]

    # --- per-head combination, assembled in-register (no scratch) -----------
    # a_s*spatial + (1-a_s)*feat == feat + a_s*(spatial - feat)
    diff = spatial - feat                                           # [TN, F]
    pieces = [feat + a_s[:, h:h + 1] * diff for h in range(NUM_HEADS)]
    concat = jnp.concatenate(pieces, axis=-1)                       # [TN, H*F]

    # --- dropout (eval: identity) + fc as a single K=128 matmul -------------
    out_ref[...] = (
        jnp.dot(concat, fcw_ref[...], preferred_element_type=jnp.float32)
        + fcb_ref[...])


def pack_params(w_omega, u_omega, fc_w, fc_b):
    """One-time host-side repack into lane-dense kernel layouts."""
    # [H, F, hd] -> [F, H*hd]  (columns h*hd:(h+1)*hd hold w_omega[h])
    w_all = jnp.transpose(w_omega, (1, 0, 2)).reshape(
        IN_FEAT, NUM_HEADS * HEAD_DIM)
    # block-diagonal U: [H*hd, H], column h holds u_omega[h]
    u_blk = jnp.zeros((NUM_HEADS * HEAD_DIM, NUM_HEADS), jnp.float32)
    for h in range(NUM_HEADS):
        u_blk = u_blk.at[h * HEAD_DIM:(h + 1) * HEAD_DIM, h].set(
            u_omega[h, :, 0])
    fcw_t = fc_w.T                                   # [H*F, OUT]
    fcb = fc_b.reshape(1, OUT_FEAT)                  # [1, OUT]
    return w_all, u_blk, fcw_t, fcb


@functools.partial(jax.jit, static_argnames=("tile_n",))
def multi_head_attention(emb_spatial, emb_feat, w_all, u_blk, fcw_t, fcb,
                         *, tile_n=TILE_N):
    """Forward pass. Params must already be packed via pack_params()."""
    n = emb_spatial.shape[0]
    n_pad = pl.cdiv(n, tile_n) * tile_n
    if n_pad != n:
        pad = ((0, n_pad - n), (0, 0))
        emb_spatial = jnp.pad(emb_spatial, pad)
        emb_feat = jnp.pad(emb_feat, pad)

    # advisory cost estimate (tiny kernel; helps XLA scheduling around it)
    flops = (2 * 2 * n_pad * IN_FEAT * (NUM_HEADS * HEAD_DIM)      # 2 tanh dots
             + 2 * n_pad * (NUM_HEADS * HEAD_DIM) * NUM_HEADS      # (vs-vf)@U
             + 6 * n_pad * NUM_HEADS * IN_FEAT                     # combine
             + 2 * n_pad * (NUM_HEADS * IN_FEAT) * OUT_FEAT)       # fc
    transcendentals = 2 * n_pad * NUM_HEADS * HEAD_DIM + n_pad * NUM_HEADS
    bytes_accessed = 4 * (2 * n_pad * IN_FEAT + n_pad * OUT_FEAT
                          + IN_FEAT * NUM_HEADS * HEAD_DIM
                          + NUM_HEADS * HEAD_DIM * NUM_HEADS
                          + NUM_HEADS * IN_FEAT * OUT_FEAT + OUT_FEAT)

    grid_spec = pltpu.PrefetchScalarGridSpec(
        num_scalar_prefetch=0,
        grid=(n_pad // tile_n,),
        in_specs=[
            pl.BlockSpec((tile_n, IN_FEAT), lambda i: (i, 0)),
            pl.BlockSpec((tile_n, IN_FEAT), lambda i: (i, 0)),
            pl.BlockSpec((IN_FEAT, NUM_HEADS * HEAD_DIM), lambda i: (0, 0)),
            pl.BlockSpec((NUM_HEADS * HEAD_DIM, NUM_HEADS), lambda i: (0, 0)),
            pl.BlockSpec((NUM_HEADS * IN_FEAT, OUT_FEAT), lambda i: (0, 0)),
            pl.BlockSpec((1, OUT_FEAT), lambda i: (0, 0)),
        ],
        out_specs=pl.BlockSpec((tile_n, OUT_FEAT), lambda i: (i, 0)),
    )

    out = pl.pallas_call(
        _mha_kernel,
        out_shape=jax.ShapeDtypeStruct((n_pad, OUT_FEAT), jnp.float32),
        grid_spec=grid_spec,
        compiler_params=pltpu.CompilerParams(
            dimension_semantics=("parallel",)),
        cost_estimate=pl.CostEstimate(flops=flops,
                                      transcendentals=transcendentals,
                                      bytes_accessed=bytes_accessed),
    )(emb_spatial, emb_feat, w_all, u_blk, fcw_t, fcb)
    return out[:n]


# ---------------- deterministic parameter init (xavier_uniform like torch) --
def _xavier_uniform(key, shape):
    fan_in, fan_out = shape[-2], shape[-1]
    bound = jnp.sqrt(6.0 / (fan_in + fan_out))
    return jax.random.uniform(key, shape, jnp.float32, -bound, bound)


def _reference_jax(emb_spatial, emb_feat, w_omega, u_omega, fc_w, fc_b):
    """Pure-JAX reference mirroring the PyTorch forward (eval mode)."""
    emb = jnp.stack([emb_spatial, emb_feat], axis=1)                 # [N, 2, F]
    outs = []
    for h in range(NUM_HEADS):
        v = jnp.tanh(jnp.einsum("nbf,fd->nbd", emb, w_omega[h]))     # [N,2,hd]
        vu = jnp.einsum("nbd,do->nbo", v, u_omega[h])[..., 0]        # [N,2]
        alpha = jax.nn.softmax(vu + 1e-6, axis=1)                    # [N,2]
        outs.append(jnp.einsum("nbf,nb->nf", emb, alpha))            # [N,F]
    concat = jnp.concatenate(outs, axis=-1)                          # [N,H*F]
    return concat @ fc_w.T + fc_b


if __name__ == "__main__":
    key = jax.random.PRNGKey(0)
    k_s, k_f, k_w, k_u, k_fcw, k_fcb = jax.random.split(key, 6)

    emb_spatial = jax.random.normal(k_s, (N_NODES, IN_FEAT), jnp.float32)
    emb_feat = jax.random.normal(k_f, (N_NODES, IN_FEAT), jnp.float32)

    # per-head params (stacked), matching the PyTorch module
    w_omega = _xavier_uniform(k_w, (NUM_HEADS, IN_FEAT, HEAD_DIM))
    u_omega = _xavier_uniform(k_u, (NUM_HEADS, HEAD_DIM, 1))

    # fc = nn.Linear(out_feat*num_heads, out_feat)
    fc_in = OUT_FEAT * NUM_HEADS
    fc_bound = 1.0 / jnp.sqrt(fc_in)
    fc_w = jax.random.uniform(k_fcw, (OUT_FEAT, fc_in), jnp.float32,
                              -fc_bound, fc_bound)
    fc_b = jax.random.uniform(k_fcb, (OUT_FEAT,), jnp.float32,
                              -fc_bound, fc_bound)

    # one-time parameter prep (hoisted out of the per-call forward path)
    w_all, u_blk, fcw_t, fcb = pack_params(w_omega, u_omega, fc_w, fc_b)

    out = multi_head_attention(emb_spatial, emb_feat, w_all, u_blk, fcw_t, fcb)
    out = jax.block_until_ready(out)

    ref = _reference_jax(emb_spatial, emb_feat, w_omega, u_omega, fc_w, fc_b)
    assert out.shape == (N_NODES, OUT_FEAT)
    assert jnp.allclose(out, ref, atol=1e-4, rtol=1e-4), "mismatch vs reference"

    print("KERNEL_OK")
</pallas_src>

<mosaic_0001>
module attributes {stable_mosaic.version = 11 : i64} {
  func.func @_mha_kernel(%arg0: i32, %arg1: memref<128x32xf32, #tpu.memory_space<vmem>>, %arg2: memref<128x32xf32, #tpu.memory_space<vmem>>, %arg3: memref<32x32xf32, #tpu.memory_space<vmem>>, %arg4: memref<32x4xf32, #tpu.memory_space<vmem>>, %arg5: memref<128x32xf32, #tpu.memory_space<vmem>>, %arg6: memref<1x32xf32, #tpu.memory_space<vmem>>, %arg7: memref<128x32xf32, #tpu.memory_space<vmem>>) attributes {dimension_semantics = [#tpu.dimension_semantics<parallel>], iteration_bounds = array<i64: 2>, scalar_prefetch = 0 : i64, scratch_operands = 0 : i64, tpu.core_type = #tpu.core_type<tc>, window_params = [{transform_indices = @transform_0, window_bounds = array<i64: 128, 32>}, {transform_indices = @transform_1, window_bounds = array<i64: 128, 32>}, {pipeline_mode = #tpu.pipeline_mode<synchronous>, transform_indices = @transform_2, window_bounds = array<i64: 32, 32>}, {pipeline_mode = #tpu.pipeline_mode<synchronous>, transform_indices = @transform_3, window_bounds = array<i64: 32, 4>}, {pipeline_mode = #tpu.pipeline_mode<synchronous>, transform_indices = @transform_4, window_bounds = array<i64: 128, 32>}, {pipeline_mode = #tpu.pipeline_mode<synchronous>, transform_indices = @transform_5, window_bounds = array<i64: 1, 32>}, {transform_indices = @transform_6, window_bounds = array<i64: 128, 32>}]} {
    %c0 = arith.constant 0 : index
    %c0_0 = arith.constant 0 : index
    %0 = vector.load %arg1[%c0, %c0_0] : memref<128x32xf32, #tpu.memory_space<vmem>>, vector<128x32xf32>
    %c0_1 = arith.constant 0 : index
    %c0_2 = arith.constant 0 : index
    %1 = vector.load %arg2[%c0_1, %c0_2] : memref<128x32xf32, #tpu.memory_space<vmem>>, vector<128x32xf32>
    %c0_3 = arith.constant 0 : index
    %c0_4 = arith.constant 0 : index
    %2 = vector.load %arg3[%c0_3, %c0_4] : memref<32x32xf32, #tpu.memory_space<vmem>>, vector<32x32xf32>
    %cst = arith.constant dense<0.000000e+00> : vector<128x32xf32>
    %3 = tpu.matmul %0, %2, %cst {dimension_numbers = #tpu.dot_dimension_numbers<[1], [0], [0], [1], [0, 0, 1, 1], [], []>} : vector<128x32xf32>, vector<32x32xf32>, vector<128x32xf32> -> vector<128x32xf32>
    %4 = math.tanh %3 : vector<128x32xf32>
    %cst_5 = arith.constant dense<0.000000e+00> : vector<128x32xf32>
    %5 = tpu.matmul %1, %2, %cst_5 {dimension_numbers = #tpu.dot_dimension_numbers<[1], [0], [0], [1], [0, 0, 1, 1], [], []>} : vector<128x32xf32>, vector<32x32xf32>, vector<128x32xf32> -> vector<128x32xf32>
    %6 = math.tanh %5 : vector<128x32xf32>
    %7 = arith.subf %4, %6 : vector<128x32xf32>
    %c0_6 = arith.constant 0 : index
    %c0_7 = arith.constant 0 : index
    %8 = vector.load %arg4[%c0_6, %c0_7] : memref<32x4xf32, #tpu.memory_space<vmem>>, vector<32x4xf32>
    %cst_8 = arith.constant dense<0.000000e+00> : vector<128x4xf32>
    %9 = tpu.matmul %7, %8, %cst_8 {dimension_numbers = #tpu.dot_dimension_numbers<[1], [0], [0], [1], [0, 0, 1, 1], [], []>} : vector<128x32xf32>, vector<32x4xf32>, vector<128x4xf32> -> vector<128x4xf32>
    %10 = arith.negf %9 : vector<128x4xf32>
    %11 = math.exp %10 : vector<128x4xf32>
    %cst_9 = arith.constant 1.000000e+00 : f32
    %12 = vector.broadcast %cst_9 : f32 to vector<128x4xf32>
    %13 = arith.addf %12, %11 : vector<128x4xf32>
    %14 = arith.divf %12, %13 : vector<128x4xf32>
    %15 = arith.subf %0, %1 : vector<128x32xf32>
    %16 = vector.extract_strided_slice %14 {offsets = [0, 0], sizes = [128, 1], strides = [1, 1]} : vector<128x4xf32> to vector<128x1xf32>
    %17 = vector.broadcast %16 : vector<128x1xf32> to vector<128x32xf32>
    %18 = arith.mulf %17, %15 : vector<128x32xf32>
    %19 = arith.addf %1, %18 : vector<128x32xf32>
    %20 = vector.extract_strided_slice %14 {offsets = [0, 1], sizes = [128, 1], strides = [1, 1]} : vector<128x4xf32> to vector<128x1xf32>
    %21 = vector.broadcast %20 : vector<128x1xf32> to vector<128x32xf32>
    %22 = arith.mulf %21, %15 : vector<128x32xf32>
    %23 = arith.addf %1, %22 : vector<128x32xf32>
    %24 = vector.extract_strided_slice %14 {offsets = [0, 2], sizes = [128, 1], strides = [1, 1]} : vector<128x4xf32> to vector<128x1xf32>
    %25 = vector.broadcast %24 : vector<128x1xf32> to vector<128x32xf32>
    %26 = arith.mulf %25, %15 : vector<128x32xf32>
    %27 = arith.addf %1, %26 : vector<128x32xf32>
    %28 = vector.extract_strided_slice %14 {offsets = [0, 3], sizes = [128, 1], strides = [1, 1]} : vector<128x4xf32> to vector<128x1xf32>
    %29 = vector.broadcast %28 : vector<128x1xf32> to vector<128x32xf32>
    %30 = arith.mulf %29, %15 : vector<128x32xf32>
    %31 = arith.addf %1, %30 : vector<128x32xf32>
    %32 = tpu.concatenate %19, %23, %27, %31 in 1 : vector<128x32xf32>, vector<128x32xf32>, vector<128x32xf32>, vector<128x32xf32> -> vector<128x128xf32>
    %c0_10 = arith.constant 0 : index
    %c0_11 = arith.constant 0 : index
    %33 = vector.load %arg5[%c0_10, %c0_11] : memref<128x32xf32, #tpu.memory_space<vmem>>, vector<128x32xf32>
    %cst_12 = arith.constant dense<0.000000e+00> : vector<128x32xf32>
    %34 = tpu.matmul %32, %33, %cst_12 {dimension_numbers = #tpu.dot_dimension_numbers<[1], [0], [0], [1], [0, 0, 1, 1], [], []>} : vector<128x128xf32>, vector<128x32xf32>, vector<128x32xf32> -> vector<128x32xf32>
    %c0_13 = arith.constant 0 : index
    %c0_14 = arith.constant 0 : index
    %35 = vector.load %arg6[%c0_13, %c0_14] : memref<1x32xf32, #tpu.memory_space<vmem>>, vector<1x32xf32>
    %36 = vector.broadcast %35 : vector<1x32xf32> to vector<128x32xf32>
    %37 = arith.addf %34, %36 : vector<128x32xf32>
    %c0_15 = arith.constant 0 : index
    %c0_16 = arith.constant 0 : index
    %38 = vector.load %arg7[%c0_15, %c0_16] : memref<128x32xf32, #tpu.memory_space<vmem>>, vector<128x32xf32>
    tpu.vector_store %arg7[%c0_15, %c0_16], %37 {strides = array<i32>} : memref<128x32xf32, #tpu.memory_space<vmem>>, vector<128x32xf32>,
    return
  }
  func.func @transform_0(%arg0: i32) -> (i32, i32) {
    %c0_i32 = arith.constant 0 : i32
    %c0_i32_0 = arith.constant 0 : i32
    return %arg0, %c0_i32 : i32, i32
  }
  func.func @transform_1(%arg0: i32) -> (i32, i32) {
    %c0_i32 = arith.constant 0 : i32
    %c0_i32_0 = arith.constant 0 : i32
    return %arg0, %c0_i32 : i32, i32
  }
  func.func @transform_2(%arg0: i32) -> (i32, i32) {
    %c0_i32 = arith.constant 0 : i32
    %c0_i32_0 = arith.constant 0 : i32
    %c0_i32_1 = arith.constant 0 : i32
    return %c0_i32, %c0_i32_0 : i32, i32
  }
  func.func @transform_3(%arg0: i32) -> (i32, i32) {
    %c0_i32 = arith.constant 0 : i32
    %c0_i32_0 = arith.constant 0 : i32
    %c0_i32_1 = arith.constant 0 : i32
    return %c0_i32, %c0_i32_0 : i32, i32
  }
  func.func @transform_4(%arg0: i32) -> (i32, i32) {
    %c0_i32 = arith.constant 0 : i32
    %c0_i32_0 = arith.constant 0 : i32
    %c0_i32_1 = arith.constant 0 : i32
    return %c0_i32, %c0_i32_0 : i32, i32
  }
  func.func @transform_5(%arg0: i32) -> (i32, i32) {
    %c0_i32 = arith.constant 0 : i32
    %c0_i32_0 = arith.constant 0 : i32
    %c0_i32_1 = arith.constant 0 : i32
    return %c0_i32, %c0_i32_0 : i32, i32
  }
  func.func @transform_6(%arg0: i32) -> (i32, i32) {
    %c0_i32 = arith.constant 0 : i32
    %c0_i32_0 = arith.constant 0 : i32
    return %arg0, %c0_i32 : i32, i32
  }
}

</mosaic_0001>

<bundles_post_ra>
// kernel: multi_head_attention.1
= control target key start
LH: loop header
LB: loop body
LE: loop exit
PB: predicated region body
PF: predicated region fallthrough
CT: control target
= control target key end

     0   :  { %s2705_s21 = smov 0   ;;  %s3496_s0 = inlined_call_operand.vmem [shape: f32[256,32], index: 0, kind: input, shape index: {}]   ;;  %s3497_s1 = inlined_call_operand.vmem [shape: f32[256,32], index: 1, kind: input, shape index: {}]   ;;  %s3498_s2 = inlined_call_operand.vmem [shape: f32[32,32], index: 2, kind: input, shape index: {}]   ;;  %s3499_s3 = inlined_call_operand.vmem [shape: f32[32,4], index: 3, kind: input, shape index: {}]   ;;  %s3500_s4 = inlined_call_operand.vmem [shape: f32[128,32], index: 4, kind: input, shape index: {}]   ;;  %s3501_s5 = inlined_call_operand.vmem [shape: f32[1,32], index: 5, kind: input, shape index: {}]   ;;  %s3502_s6 = inlined_call_operand.vmem [shape: f32[256,32], index: 6, kind: output, shape index: {}]  }
   0x1 LB: > { %s1951_s22 = sadd.s32 4294967295, %s2661_s21   ;;  %p1955_p0 = scmp.ge.s32.totalorder %s2661_s21, 1  ;;  %s2661_s21 = sphi %s2705_s21, %s16_s21  }
   0x2   : > { %p224_p1 = scmp.lt.s32.totalorder %s2661_s21, 3 }
   0x4   : > { %p225_p2 = pnand %p1955_p0, %p224_p1 }
   0x5   : > { %v309_v0 = vld [vmem:[%s3498_s2] sm:$0xff] (!%p225_p2)  ;;  %v310_v1 = vld [vmem:[%s3498_s2 + $0x8] sm:$0xff] (!%p225_p2)  ;;  %v311_v2 = vld [vmem:[%s3498_s2 + $0x10] sm:$0xff] (!%p225_p2)  ;;  %s1956_s29 = sshll.u32 (!%p225_p2), %s1951_s22, 4  ;;  %vm313_vm0 = vcmask (!%p225_p2), 261120   ;;  %s2667_s24 = smov (!%p225_p2), 32  }
   0x6   : > { %228 = sbr.rel (%p225_p2) target bundleno = 1116 (0x45c), region = 44  ;;  %v2273_v3 = vpack.c.bf16 (!%p225_p2), %v310_v1, %v309_v0  ;;  %v312_v4 = vld [vmem:[%s3498_s2 + $0x18] sm:$0xff] (!%p225_p2)  ;;  %p260_p3 = scmp.lt.s32.totalorder (!%p225_p2), %s1956_s29, 31  ;;  %v748_v6 = vld [vmem:[%s3499_s3] sm:$0xff] (!%p225_p2)  ;;  %v749_v7 = vld [vmem:[%s3499_s3 + $0x8] sm:$0xff] (!%p225_p2)  ;;  %vm1665_vm1 = vcmask (!%p225_p2), 523264  }
   0x7   : > { %v2277_v5 = vpack.c.bf16 (!%p225_p2), %v312_v4, %v311_v2  ;;  %v2289_v8 = vpack.c.bf16 (!%p225_p2), %v749_v7, %v748_v6  ;;  %v750_v9 = vld [vmem:[%s3499_s3 + $0x10] sm:$0xff] (!%p225_p2)  ;;  %v751_v12 = vld [vmem:[%s3499_s3 + $0x18] sm:$0xff] (!%p225_p2)  ;;  %s2668_s25 = smov (!%p225_p2), 64   ;;  %s2669_s19 = smov (!%p225_p2), 96   ;;  %vm1682_vm2 = vcmask (!%p225_p2), 785408  }
   0x8   : > { %2274 = vmatprep.subr.bf16.mxu0 (!%p225_p2), %v2273_v3  ;;  %2282 = vmatprep.subr.bf16.mxu1 (!%p225_p2), %v2273_v3  ;;  %v2293_v17 = vpack.c.bf16 (!%p225_p2), %v751_v12, %v750_v9 }
   0x9   : > { %2276 = vmatpush3.bf16.msra.mxu0 (!%p225_p2), %v2273_v3  ;;  %2284 = vmatpush3.bf16.msra.mxu1 (!%p225_p2), %v2273_v3 }
   0xa   : > { %2278 = vmatprep.subr.bf16.mxu0 (!%p225_p2), %v2277_v5  ;;  %2286 = vmatprep.subr.bf16.mxu1 (!%p225_p2), %v2277_v5 }
   0xd   : > { %s3504_s29 = smov (!%p260_p3, %s1956_s29), 31  ;;  %2280 = vmatpush3.bf16.msra.mxu0 %v2277_v5  ;;  %2288 = vmatpush3.bf16.msra.mxu1 %v2277_v5 }
   0xe   : > { %s2731_s12 = sshll.u32 %s3504_s29, 3  ;;  %2290 = vmatprep.subr.bf16.mxu0 %v2289_v8 }
   0xf   : > { %s2737_s15 = scalar_lea.vmem %s3496_s0, %s2731_s12  ;;  %s2743_s18 = scalar_lea.vmem %s3497_s1, %s2731_s12 }
  0x10   : > { %v2749_v10 = vld [vmem:[%s2737_s15] sm:$0xff]  ;;  %v2758_v13 = vld [vmem:[%s2737_s15 + $0x8] sm:$0xff]  ;;  %v2768_v15 = vld [vmem:[%s2737_s15 + $0x10] sm:$0xff]  ;;  %s3459_s20 = scalar_lea.vmem %s3502_s6, %s2731_s12 }
  0x11   : > { %v2752_v11 = vld [vmem:[%s2743_s18] sm:$0xff]  ;;  %v2761_v14 = vld [vmem:[%s2743_s18 + $0x8] sm:$0xff]  ;;  %2129 = vmatprep.mubr.msk.f32.mxu0 %vm313_vm0, %v2749_v10  ;;  %v2771_v16 = vld [vmem:[%s2743_s18 + $0x10] sm:$0xff] }
  0x12   : > { %2161 = vmatprep.mubr.msk.f32.mxu1 %vm313_vm0, %v2752_v11  ;;  %2130 = vmatmul.mubr.msk.f32.vlgmr.msra.gmra.mrb[0].mxu0 %vm313_vm0, %v2758_v13  ;;  %v2782_v18 = vld [vmem:[%s2737_s15 + $0x18] sm:$0xff]  ;;  %v2788_v20 = vld [vmem:[%s2737_s15 + $0x20] sm:$0xff]  ;;  %v2802_v22 = vld [vmem:[%s2737_s15 + $0x28] sm:$0xff] }
  0x13   : > { %2162 = vmatmul.mubr.msk.f32.vlgmr.msra.gmra.mrb[0].mxu1 %vm313_vm0, %v2761_v14  ;;  %2132 = vmatprep.mubr.msk.f32.mxu0 %vm313_vm0, %v2768_v15  ;;  %v2785_v19 = vld [vmem:[%s2743_s18 + $0x18] sm:$0xff]  ;;  %v2791_v21 = vld [vmem:[%s2743_s18 + $0x20] sm:$0xff]  ;;  %v2805_v23 = vld [vmem:[%s2743_s18 + $0x28] sm:$0xff] }
  0x14   : > { %2164 = vmatprep.mubr.msk.f32.mxu1 %vm313_vm0, %v2771_v16  ;;  %2292 = vmatpush3.bf16.msra.mxu0 %v2289_v8  ;;  %v283_v24 = vld [vmem:[%s2737_s15 + $0x30] sm:$0xff]  ;;  %v284_v26 = vld [vmem:[%s2737_s15 + $0x38] sm:$0xff]  ;;  %v2818_v28 = vld [vmem:[%s2737_s15 + $0x40] sm:$0xff] }
  0x15   : > { %2294 = vmatprep.subr.bf16.mxu0 %v2293_v17  ;;  %v299_v25 = vld [vmem:[%s2743_s18 + $0x30] sm:$0xff]  ;;  %v300_v27 = vld [vmem:[%s2743_s18 + $0x38] sm:$0xff]  ;;  %v2821_v29 = vld [vmem:[%s2743_s18 + $0x40] sm:$0xff] }
  0x16   : > { %2133 = vmatmul.mubr.msk.f32.gmra.mrb[2].mxu0 %vm313_vm0, %v2782_v18  ;;  %v2830_v30 = vld [vmem:[%s2737_s15 + $0x48] sm:$0xff]  ;;  %v287_v32 = vld [vmem:[%s2737_s15 + $0x50] sm:$0xff]  ;;  %v288_v34 = vld [vmem:[%s2737_s15 + $0x58] sm:$0xff] }
  0x17   : > { %2165 = vmatmul.mubr.msk.f32.gmra.mrb[2].mxu1 %vm313_vm0, %v2785_v19  ;;  %2135 = vmatprep.mubr.msk.f32.mxu0 %vm313_vm0, %v2788_v20  ;;  %v2833_v31 = vld [vmem:[%s2743_s18 + $0x48] sm:$0xff]  ;;  %v303_v33 = vld [vmem:[%s2743_s18 + $0x50] sm:$0xff]  ;;  %v304_v35 = vld [vmem:[%s2743_s18 + $0x58] sm:$0xff] }
  0x18   : > { %2167 = vmatprep.mubr.msk.f32.mxu1 %vm313_vm0, %v2791_v21  ;;  %2296 = vmatpush3.bf16.msra.mxu0 %v2293_v17  ;;  %v289_v36 = vld [vmem:[%s2737_s15 + $0x60] sm:$0xff]  ;;  %v290_v38 = vld [vmem:[%s2737_s15 + $0x68] sm:$0xff]  ;;  %v291_v40 = vld [vmem:[%s2737_s15 + $0x70] sm:$0xff] }
  0x19   : > { %v305_v37 = vld [vmem:[%s2743_s18 + $0x60] sm:$0xff]  ;;  %v306_v39 = vld [vmem:[%s2743_s18 + $0x68] sm:$0xff]  ;;  %v307_v41 = vld [vmem:[%s2743_s18 + $0x70] sm:$0xff] }
  0x1a   : > { %2136 = vmatmul.mubr.msk.f32.gmra.mrb[4].mxu0 %vm313_vm0, %v2802_v22  ;;  %v292_v42 = vld [vmem:[%s2737_s15 + $0x78] sm:$0xff] }
  0x1b   : > { %2168 = vmatmul.mubr.msk.f32.gmra.mrb[4].mxu1 %vm313_vm0, %v2805_v23  ;;  %2138 = vmatprep.mubr.msk.f32.mxu0 %vm313_vm0, %v283_v24  ;;  %v308_v43 = vld [vmem:[%s2743_s18 + $0x78] sm:$0xff] }
  0x1c   : > { %2170 = vmatprep.mubr.msk.f32.mxu1 %vm313_vm0, %v299_v25 }
  0x1e   : > { %2139 = vmatmul.mubr.msk.f32.gmra.mrb[6].mxu0 %vm313_vm0, %v284_v26 }
  0x1f   : > { %2171 = vmatmul.mubr.msk.f32.gmra.mrb[6].mxu1 %vm313_vm0, %v300_v27  ;;  %2141 = vmatprep.mubr.msk.f32.mxu0 %vm313_vm0, %v2818_v28 }
  0x20   : > { %2173 = vmatprep.mubr.msk.f32.mxu1 %vm313_vm0, %v2821_v29 }
  0x22   : > { %2142 = vmatmul.mubr.msk.f32.gmra.mrb[8].mxu0 %vm313_vm0, %v2830_v30 }
  0x23   : > { %2174 = vmatmul.mubr.msk.f32.gmra.mrb[8].mxu1 %vm313_vm0, %v2833_v31  ;;  %2144 = vmatprep.mubr.msk.f32.mxu0 %vm313_vm0, %v287_v32 }
  0x24   : > { %2176 = vmatprep.mubr.msk.f32.mxu1 %vm313_vm0, %v303_v33 }
  0x26   : > { %2145 = vmatmul.mubr.msk.f32.gmra.mrb[10].mxu0 %vm313_vm0, %v288_v34 }
  0x27   : > { %2177 = vmatmul.mubr.msk.f32.gmra.mrb[10].mxu1 %vm313_vm0, %v304_v35  ;;  %2147 = vmatprep.mubr.msk.f32.mxu0 %vm313_vm0, %v289_v36 }
  0x28   : > { %2179 = vmatprep.mubr.msk.f32.mxu1 %vm313_vm0, %v305_v37 }
  0x2a   : > { %2148 = vmatmul.mubr.msk.f32.gmra.mrb[12].mxu0 %vm313_vm0, %v290_v38 }
  0x2b   : > { %2180 = vmatmul.mubr.msk.f32.gmra.mrb[12].mxu1 %vm313_vm0, %v306_v39  ;;  %2150 = vmatprep.mubr.msk.f32.mxu0 %vm313_vm0, %v291_v40 }
  0x2c   : > { %2182 = vmatprep.mubr.msk.f32.mxu1 %vm313_vm0, %v307_v41 }
  0x2e   : > { %2151 = vmatmul.mubr.msk.f32.gmra.mrb[14].mxu0 %vm313_vm0, %v292_v42 }
  0x2f   : > { %2183 = vmatmul.mubr.msk.f32.gmra.mrb[14].mxu1 %vm313_vm0, %v308_v43 }
  0xe5   : > { %v2131_v44 = vpop.f32.mrb[0].mxu0 }
  0xe6   : > { %v2163_v45 = vpop.f32.mrb[0].mxu1  ;;  %2503 = vtanh.f32 %v2131_v44  ;;  %v428_v46 = vpop.f32.mrb[1].mxu0 }
  0xe7   : > { %v637_v47 = vpop.f32.mrb[1].mxu1  ;;  %2505 = vtanh.f32 %v2163_v45 }
  0xe8   : > { %2507 = vtanh.f32 %v428_v46 }
  0xe9   : > { %2509 = vtanh.f32 %v637_v47  ;;  %v2134_v48 = vpop.f32.mrb[2].mxu0 }
  0xea   : > { %v2166_v49 = vpop.f32.mrb[2].mxu1  ;;  %2511 = vtanh.f32 %v2134_v48  ;;  %v438_v50 = vpop.f32.mrb[3].mxu0 }
  0xeb   : > { %v647_v51 = vpop.f32.mrb[3].mxu1  ;;  %2513 = vtanh.f32 %v2166_v49 }
  0xec   : > { %2515 = vtanh.f32 %v438_v50 }
  0xed   : > { %2517 = vtanh.f32 %v647_v51  ;;  %v2137_v52 = vpop.f32.mrb[4].mxu0 }
  0xee   : > { %v2169_v53 = vpop.f32.mrb[4].mxu1  ;;  %2519 = vtanh.f32 %v2137_v52  ;;  %v448_v54 = vpop.f32.mrb[5].mxu0 }
  0xef   : > { %v657_v55 = vpop.f32.mrb[5].mxu1  ;;  %2521 = vtanh.f32 %v2169_v53 }
  0xf0   : > { %v2504_v56 = vpop.eup %2503  ;;  %2523 = vtanh.f32 %v448_v54 }
  0xf1   : > { %v2506_v57 = vpop.eup %2505  ;;  %2525 = vtanh.f32 %v657_v55  ;;  %v2140_v58 = vpop.f32.mrb[6].mxu0 }
  0xf2   : > { %v2172_v59 = vpop.f32.mrb[6].mxu1  ;;  %v2508_v60 = vpop.eup %2507  ;;  %v733_v61 = vsub.f32 %v2504_v56, %v2506_v57  ;;  %2527 = vtanh.f32 %v2140_v58 }
  0xf3   : > { %v458_v62 = vpop.f32.mrb[7].mxu0  ;;  %v667_v63 = vpop.f32.mrb[7].mxu1  ;;  %2529 = vtanh.f32 %v2172_v59 }
  0xf4   : > { %v2510_v0 = vpop.eup %2509  ;;  %2531 = vtanh.f32 %v458_v62 }
  0xf5   : > { %v2512_v1 = vpop.eup %2511  ;;  %v732_v2 = vsub.f32 %v2508_v60, %v2510_v0  ;;  %2533 = vtanh.f32 %v667_v63  ;;  %v2143_v4 = vpop.f32.mrb[8].mxu0 }
  0xf6   : > { %v2514_v3 = vpop.eup %2513  ;;  %v2175_v5 = vpop.f32.mrb[8].mxu1  ;;  %2535 = vtanh.f32 %v2143_v4 }
  0xf7   : > { %v2516_v6 = vpop.eup %2515  ;;  %2193 = vmatprep.mubr.msk.f32.mxu0 %vm313_vm0, %v732_v2  ;;  %v735_v7 = vsub.f32 %v2512_v1, %v2514_v3  ;;  %v468_v8 = vpop.f32.mrb[9].mxu0  ;;  %2537 = vtanh.f32 %v2175_v5 }
  0xf8   : > { %v677_v9 = vpop.f32.mrb[9].mxu1  ;;  %v2518_v12 = vpop.eup %2517  ;;  %2194 = vmatmul.mubr.msk.f32.vlgmr.msra.gmra.mrb[16].mxu0 %vm313_vm0, %v733_v61  ;;  %2539 = vtanh.f32 %v468_v8 }
  0xf9   : > { %v2520_v17 = vpop.eup %2519  ;;  %v734_v24 = vsub.f32 %v2516_v6, %v2518_v12  ;;  %2541 = vtanh.f32 %v677_v9  ;;  %v2146_v26 = vpop.f32.mrb[10].mxu0 }
  0xfa   : > { %v2522_v25 = vpop.eup %2521  ;;  %v2178_v27 = vpop.f32.mrb[10].mxu1  ;;  %2543 = vtanh.f32 %v2146_v26 }
  0xfb   : > { %v2524_v32 = vpop.eup %2523  ;;  %2196 = vmatprep.mubr.msk.f32.mxu0 %vm313_vm0, %v734_v24  ;;  %v737_v33 = vsub.f32 %v2520_v17, %v2522_v25  ;;  %v478_v34 = vpop.f32.mrb[11].mxu0  ;;  %2545 = vtanh.f32 %v2178_v27  ;;  %v2663_v24 = vmov 2   ;;  %v2664_v25 = vmov 1  }
  0xfc   : > { %v687_v35 = vpop.f32.mrb[11].mxu1  ;;  %v2526_v36 = vpop.eup %2525  ;;  %2197 = vmatmul.mubr.msk.f32.gmra.mrb[18].mxu0 %vm313_vm0, %v735_v7  ;;  %2547 = vtanh.f32 %v478_v34  ;;  %2345 = vset.pattern.permute.xlu1 %v2663_v24 }
  0xfd   : > { %v2528_v37 = vpop.eup %2527  ;;  %v736_v38 = vsub.f32 %v2524_v32, %v2526_v36  ;;  %2549 = vtanh.f32 %v687_v35  ;;  %v2149_v40 = vpop.f32.mrb[12].mxu0  ;;  %2344 = vset.pattern.permute.xlu0 %v2664_v25 }
  0xfe   : > { %v2530_v39 = vpop.eup %2529  ;;  %v2181_v41 = vpop.f32.mrb[12].mxu1  ;;  %2551 = vtanh.f32 %v2149_v40 }
  0xff   : > { %v2532_v42 = vpop.eup %2531  ;;  %2199 = vmatprep.mubr.msk.f32.mxu0 %vm313_vm0, %v736_v38  ;;  %v488_v43 = vpop.f32.mrb[13].mxu0  ;;  %v739_v45 = vsub.f32 %v2528_v37, %v2530_v39  ;;  %2553 = vtanh.f32 %v2181_v41 }
 0x100   : > { %v697_v44 = vpop.f32.mrb[13].mxu1  ;;  %v2534_v46 = vpop.eup %2533  ;;  %2200 = vmatmul.mubr.msk.f32.gmra.mrb[20].mxu0 %vm313_vm0, %v737_v33  ;;  %2555 = vtanh.f32 %v488_v43 }
 0x101   : > { %v2536_v47 = vpop.eup %2535  ;;  %v738_v48 = vsub.f32 %v2532_v42, %v2534_v46  ;;  %2557 = vtanh.f32 %v697_v44  ;;  %v2152_v50 = vpop.f32.mrb[14].mxu0 }
 0x102   : > { %v2538_v49 = vpop.eup %2537  ;;  %v2184_v51 = vpop.f32.mrb[14].mxu1  ;;  %2559 = vtanh.f32 %v2152_v50 }
 0x103   : > { %v2540_v52 = vpop.eup %2539  ;;  %2202 = vmatprep.mubr.msk.f32.mxu0 %vm313_vm0, %v738_v48  ;;  %v498_v53 = vpop.f32.mrb[15].mxu0  ;;  %v741_v55 = vsub.f32 %v2536_v47, %v2538_v49  ;;  %2561 = vtanh.f32 %v2184_v51 }
 0x104   : > { %v707_v54 = vpop.f32.mrb[15].mxu1  ;;  %v2542_v56 = vpop.eup %2541  ;;  %2203 = vmatmul.mubr.msk.f32.gmra.mrb[22].mxu0 %vm313_vm0, %v739_v45  ;;  %2563 = vtanh.f32 %v498_v53 }
 0x105   : > { %v2544_v57 = vpop.eup %2543  ;;  %v740_v58 = vsub.f32 %v2540_v52, %v2542_v56  ;;  %2565 = vtanh.f32 %v707_v54 }
 0x106   : > { %v2546_v59 = vpop.eup %2545 }
 0x107   : > { %v2548_v60 = vpop.eup %2547  ;;  %2205 = vmatprep.mubr.msk.f32.mxu0 %vm313_vm0, %v740_v58  ;;  %v743_v61 = vsub.f32 %v2544_v57, %v2546_v59 }
 0x108   : > { %v2550_v62 = vpop.eup %2549  ;;  %2206 = vmatmul.mubr.msk.f32.gmra.mrb[24].mxu0 %vm313_vm0, %v741_v55 }
 0x109   : > { %v2552_v63 = vpop.eup %2551  ;;  %v742_v0 = vsub.f32 %v2548_v60, %v2550_v62 }
 0x10a   : > { %v2554_v1 = vpop.eup %2553 }
 0x10b   : > { %v2556_v2 = vpop.eup %2555  ;;  %2208 = vmatprep.mubr.msk.f32.mxu0 %vm313_vm0, %v742_v0  ;;  %v745_v3 = vsub.f32 %v2552_v63, %v2554_v1  ;;  %v2665_v1 = vmov 3  }
 0x10c   : > { %v2558_v4 = vpop.eup %2557  ;;  %2209 = vmatmul.mubr.msk.f32.gmra.mrb[26].mxu0 %vm313_vm0, %v743_v61 }
 0x10d   : > { %v2560_v5 = vpop.eup %2559  ;;  %v744_v6 = vsub.f32 %v2556_v2, %v2558_v4  ;;  %v2666_v2 = vmov 0  }
 0x10e   : > { %v2562_v7 = vpop.eup %2561 }
 0x10f   : > { %v2564_v8 = vpop.eup %2563  ;;  %2211 = vmatprep.mubr.msk.f32.mxu0 %vm313_vm0, %v744_v6  ;;  %v747_v9 = vsub.f32 %v2560_v5, %v2562_v7 }
 0x110   : > { %v2566_v12 = vpop.eup %2565  ;;  %2212 = vmatmul.mubr.msk.f32.gmra.mrb[28].mxu0 %vm313_vm0, %v745_v3 }
 0x111   : > { %v746_v17 = vsub.f32 %v2564_v8, %v2566_v12 }
 0x113   : > { %2214 = vmatprep.mubr.msk.f32.mxu0 %vm313_vm0, %v746_v17 }
 0x114   : > { %2215 = vmatmul.mubr.msk.f32.gmra.mrb[30].mxu0 %vm313_vm0, %v747_v9 }
 0x1cb   : > { %v2195_v26 = vpop.f32.mrb[16].mxu0 }
 0x1cc   : > { %v2011_v27 = vmul.f32 -1.442695, %v2195_v26  ;;  %v866_v32 = vpop.f32.mrb[17].mxu0 }
 0x1cd   : > { %v2010_v34 = vmul.f32 -1.442695, %v866_v32 }
 0x1ce   : > { %2567 = vpow2.f32 %v2011_v27 }
 0x1cf   : > { %v2198_v33 = vpop.f32.mrb[18].mxu0  ;;  %2569 = vpow2.f32 %v2010_v34 }
 0x1d0   : > { %v876_v35 = vpop.f32.mrb[19].mxu0  ;;  %v2013_v36 = vmul.f32 -1.442695, %v2198_v33 }
 0x1d1   : > { %v2012_v0 = vmul.f32 -1.442695, %v876_v35 }
 0x1d2   : > { %2571 = vpow2.f32 %v2013_v36 }
 0x1d3   : > { %v2201_v37 = vpop.f32.mrb[20].mxu0 }
 0x1d4   : > { %v886_v38 = vpop.f32.mrb[21].mxu0  ;;  %v2015_v39 = vmul.f32 -1.442695, %v2201_v37 }
 0x1d5   : > { %v2014_v44 = vmul.f32 -1.442695, %v886_v38 }
 0x1d6   : > { %2573 = vpow2.f32 %v2015_v39 }
 0x1d7   : > { %v2204_v40 = vpop.f32.mrb[22].mxu0 }
 0x1d8   : > { %v2568_v41 = vpop.eup %2567  ;;  %v2881_v42 = vpop.f32.mrb[23].mxu0  ;;  %v2017_v50 = vmul.f32 -1.442695, %v2204_v40 }
 0x1d9   : > { %v994_v43 = vadd.f32 1.0, %v2568_v41  ;;  %v2570_v47 = vpop.eup %2569 }
 0x1da   : > { %v993_v52 = vadd.f32 1.0, %v2570_v47 }
 0x1db   : > { %2575 = vrcp.f32 %v994_v43  ;;  %v2207_v45 = vpop.f32.mrb[24].mxu0 }
 0x1dc   : > { %v906_v46 = vpop.f32.mrb[25].mxu0  ;;  %2577 = vpow2.f32 %v2014_v44  ;;  %v2572_v49 = vpop.eup %2571  ;;  %v2019_v56 = vmul.f32 -1.442695, %v2207_v45 }
 0x1dd   : > { %v996_v53 = vadd.f32 1.0, %v2572_v49  ;;  %2579 = vpow2.f32 %v2017_v50  ;;  %v2018_v17 = vmul.f32 -1.442695, %v906_v46  ;;  %v2016_v49 = vmul.f32 -1.442695, %v2881_v42 }
 0x1de   : > { %2581 = vrcp.f32 %v993_v52 }
 0x1df   : > { %v2210_v48 = vpop.f32.mrb[26].mxu0  ;;  %2583 = vrcp.f32 %v996_v53 }
 0x1e0   : > { %v2883_v51 = vpop.f32.mrb[27].mxu0  ;;  %v2574_v55 = vpop.eup %2573  ;;  %2585 = vpow2.f32 %v2019_v56  ;;  %v2021_v62 = vmul.f32 -1.442695, %v2210_v48 }
 0x1e1   : > { %v998_v59 = vadd.f32 1.0, %v2574_v55  ;;  %v2020_v52 = vmul.f32 -1.442695, %v2883_v51 }
 0x1e3   : > { %v2213_v54 = vpop.f32.mrb[28].mxu0  ;;  %2587 = vrcp.f32 %v998_v59 }
 0x1e4   : > { %v2885_v57 = vpop.f32.mrb[29].mxu0  ;;  %2589 = vpow2.f32 %v2021_v62  ;;  %v2023_v4 = vmul.f32 -1.442695, %v2213_v54 }
 0x1e5   : > { %v2576_v58 = vpop.eup %2575  ;;  %2591 = vpow2.f32 %v2012_v0  ;;  %v2022_v54 = vmul.f32 -1.442695, %v2885_v57 }
 0x1e6   : > { %1270 = vperm.xlu1 %2345, %v2576_v58   ;;  %1174 = vperm.xlu0 %2344, %v2576_v58   ;;  %v2578_v61 = vpop.eup %2577 }
 0x1e7   : > { %v2216_v60 = vpop.f32.mrb[30].mxu0  ;;  %v997_v3 = vadd.f32 1.0, %v2578_v61  ;;  %v2580_v5 = vpop.eup %2579 }
 0x1e8   : > { %v2887_v63 = vpop.f32.mrb[31].mxu0  ;;  %v2891_v6 = vpop.eup %2581  ;;  %v2025_v7 = vmul.f32 -1.442695, %v2216_v60  ;;  %v1000_v9 = vadd.f32 1.0, %v2580_v5 }
 0x1e9   : > { %2593 = vrcp.f32 %v997_v3  ;;  %v2584_v8 = vpop.eup %2583  ;;  %v2024_v51 = vmul.f32 -1.442695, %v2887_v63 }
 0x1ea   : > { %2346 = vset.pattern.permute.xlu1 %v2665_v1  ;;  %2347 = vset.pattern.permute.xlu0 %v2666_v2  ;;  %2595 = vpow2.f32 %v2023_v4  ;;  %v2586_v12 = vpop.eup %2585 }
 0x1eb   : > { %1366 = vperm.xlu1 %2346, %v2576_v58   ;;  %1064 = vperm.xlu0 %2347, %v2576_v58   ;;  %2597 = vpow2.f32 %v2025_v7  ;;  %v1002_v27 = vadd.f32 1.0, %v2586_v12  ;;  %v2990_v12 = vsub.f32 %v2749_v10, %v2752_v11 }
 0x1ec   : > { %2599 = vrcp.f32 %v1000_v9 }
 0x1ed   : > { %v2898_v26 = vpop.eup %2587  ;;  %2601 = vpow2.f32 %v2018_v17 }
 0x1ee   : > { %v2590_v32 = vpop.eup %2589  ;;  %2603 = vrcp.f32 %v1002_v27 }
 0x1ef   : > { %2349 = vset.pattern.permute.xlu1 %v2663_v24  ;;  %2348 = vset.pattern.permute.xlu0 %v2664_v25  ;;  %v2592_v33 = vpop.eup %2591  ;;  %v1004_v35 = vadd.f32 1.0, %v2590_v32 }
 0x1f0   : > { %1266 = vperm.xlu1 %2349, %v2891_v6   ;;  %1170 = vperm.xlu0 %2348, %v2891_v6   ;;  %v995_v37 = vadd.f32 1.0, %v2592_v33 }
 0x1f1   : > { %2605 = vrcp.f32 %v1004_v35 }
 0x1f2   : > { %2607 = vrcp.f32 %v995_v37 }
 0x1f3   : > { %v2902_v34 = vpop.eup %2593 }
 0x1f4   : > { %2350 = vset.pattern.permute.xlu1 %v2666_v2  ;;  %1182 = vperm.xlu0 %2348, %v2584_v8   ;;  %v2596_v36 = vpop.eup %2595 }
 0x1f5   : > { %1059 = vperm.xlu1 %2350, %v2891_v6   ;;  %v1006_v38 = vadd.f32 1.0, %v2596_v36  ;;  %v2598_v39 = vpop.eup %2597 }
 0x1f6   : > { %v2908_v40 = vpop.eup %2599  ;;  %v1008_v41 = vadd.f32 1.0, %v2598_v39 }
 0x1f7   : > { %2609 = vrcp.f32 %v1006_v38  ;;  %v2602_v43 = vpop.eup %2601 }
 0x1f8   : > { %1190 = vperm.xlu0 %2348, %v2898_v26   ;;  %v2912_v44 = vpop.eup %2603  ;;  %2611 = vrcp.f32 %v1008_v41  ;;  %v1001_v45 = vadd.f32 1.0, %v2602_v43 }
 0x1f9   : > { %2351 = vset.pattern.permute.xlu1 %v2663_v24 }
 0x1fa   : > { %1278 = vperm.xlu1 %2351, %v2584_v8   ;;  %2613 = vrcp.f32 %v1001_v45 }
 0x1fb   : > { %v2916_v46 = vpop.eup %2605  ;;  %2615 = vpow2.f32 %v2016_v49 }
 0x1fc   : > { %2361 = vset.pattern.permute.xlu0 %v2666_v2  ;;  %v2608_v47 = vpop.eup %2607  ;;  %2617 = vpow2.f32 %v2020_v52 }
 0x1fd   : > { %1079 = vperm.xlu0 %2361, %v2902_v34   ;;  %2619 = vpow2.f32 %v2022_v54  ;;  %v1702_v54 = vld [vmem:[%s3500_s4 + $0x18] sm:$0xff] }
 0x1fe   : > { %2352 = vset.pattern.permute.xlu1 %v2665_v1  ;;  %2621 = vpow2.f32 %v2024_v51  ;;  %v3039_v51 = vsub.f32 %v2782_v18, %v2785_v19  ;;  %v3056_v18 = vsub.f32 %v2768_v15, %v2771_v16 }
 0x1ff   : > { %1374 = vperm.xlu1 %2352, %v2584_v8  }
 0x201   : > { %2362 = vset.pattern.permute.xlu0 %v2664_v25  ;;  %v2920_v48 = vpop.eup %2609 }
 0x202   : > { %1198 = vperm.xlu0 %2362, %v2908_v40   ;;  %v2925_v50 = vpop.eup %2611 }
 0x203   : > { %2353 = vset.pattern.permute.xlu1 %v2666_v2 }
 0x204   : > { %1074 = vperm.xlu1 %2353, %v2584_v8   ;;  %v2614_v53 = vpop.eup %2613 }
 0x205   : > { %v2616_v42 = vpop.eup %2615 }
 0x206   : > { %1206 = vperm.xlu0 %2362, %v2912_v44   ;;  %v999_v55 = vadd.f32 1.0, %v2616_v42  ;;  %v2618_v56 = vpop.eup %2617 }
 0x207   : > { %v1003_v57 = vadd.f32 1.0, %v2618_v56  ;;  %v2620_v58 = vpop.eup %2619  ;;  %v1703_v56 = vld [vmem:[%s3500_s4 + $0x20] sm:$0xff] }
 0x208   : > { %2354 = vset.pattern.permute.xlu1 %v2664_v25  ;;  %2623 = vrcp.f32 %v999_v55  ;;  %v1005_v59 = vadd.f32 1.0, %v2620_v58  ;;  %v2622_v60 = vpop.eup %2621  ;;  %v3043_v55 = vsub.f32 %v2830_v30, %v2833_v31 }
 0x209   : > { %1178 = vperm.xlu1 %2354, %v2608_v47   ;;  %2625 = vrcp.f32 %v1003_v57  ;;  %v1007_v62 = vadd.f32 1.0, %v2622_v60  ;;  %v1705_v60 = vld [vmem:[%s3500_s4 + $0x30] sm:$0xff] }
 0x20a   : > { %1214 = vperm.xlu0 %2362, %v2916_v46   ;;  %2627 = vrcp.f32 %v1005_v59 }
 0x20b   : > { %2629 = vrcp.f32 %v1007_v62  ;;  %v1706_v62 = vld [vmem:[%s3500_s4 + $0x38] sm:$0xff] }
 0x20d   : > { %2355 = vset.pattern.permute.xlu1 %v2663_v24 }
 0x20e   : > { %1274 = vperm.xlu1 %2355, %v2608_v47   ;;  %1222 = vperm.xlu0 %2362, %v2920_v48  }
 0x212   : > { %2356 = vset.pattern.permute.xlu1 %v2666_v2  ;;  %1230 = vperm.xlu0 %2362, %v2925_v50   ;;  %v2945_v61 = vpop.eup %2623 }
 0x213   : > { %1069 = vperm.xlu1 %2356, %v2608_v47   ;;  %v2951_v63 = vpop.eup %2625 }
 0x214   : > { %v2628_v0 = vpop.eup %2627 }
 0x215   : > { %v2956_v3 = vpop.eup %2629 }
 0x216   : > { %2379 = vset.pattern.permute.xlu0 %v2666_v2 }
 0x217   : > { %2357 = vset.pattern.permute.xlu1 %v2663_v24  ;;  %1099 = vperm.xlu0 %2379, %v2614_v53  }
 0x218   : > { %1286 = vperm.xlu1 %2357, %v2898_v26  }
 0x21b   : > { %1104 = vperm.xlu0 %2379, %v2912_v44  }
 0x21c   : > { %2358 = vset.pattern.permute.xlu1 %v2665_v1 }
 0x21d   : > { %1382 = vperm.xlu1 %2358, %v2898_v26  }
 0x21f   : > { %2380 = vset.pattern.permute.xlu0 %v2665_v1 }
 0x220   : > { %1362 = vperm.xlu0 %2380, %v2891_v6   ;;  %v2980_v6 = vsub.f32 %v2758_v13, %v2761_v14 }
 0x221   : > { %2359 = vset.pattern.permute.xlu1 %v2664_v25 }
 0x222   : > { %1186 = vperm.xlu1 %2359, %v2902_v34  }
 0x224   : > { %1370 = vperm.xlu0 %2380, %v2608_v47   ;;  %v1699_v47 = vld [vmem:[%s3500_s4] sm:$0xff] }
 0x226   : > { %2360 = vset.pattern.permute.xlu1 %v2663_v24 }
 0x227   : > { %1282 = vperm.xlu1 %2360, %v2902_v34  }
 0x228   : > { %1378 = vperm.xlu0 %2380, %v2902_v34  }
 0x22b   : > { %1294 = vperm.xlu1 %2360, %v2908_v40  }
 0x22c   : > { %1386 = vperm.xlu0 %2380, %v2945_v61  }
 0x22f   : > { %2363 = vset.pattern.permute.xlu1 %v2665_v1 }
 0x230   : > { %1390 = vperm.xlu1 %2363, %v2908_v40   ;;  %1394 = vperm.xlu0 %2380, %v2614_v53  }
 0x234   : > { %2364 = vset.pattern.permute.xlu1 %v2664_v25  ;;  %1402 = vperm.xlu0 %2380, %v2951_v63  }
 0x235   : > { %1194 = vperm.xlu1 %2364, %v2945_v61  }
 0x238   : > { %1410 = vperm.xlu0 %2380, %v2628_v0  }
 0x239   : > { %2365 = vset.pattern.permute.xlu1 %v2663_v24 }
 0x23a   : > { %1290 = vperm.xlu1 %2365, %v2945_v61  }
 0x23c   : > { %1418 = vperm.xlu0 %2380, %v2956_v3  }
 0x23e   : > { %1302 = vperm.xlu1 %2365, %v2912_v44  }
 0x240   : > { %2381 = vset.pattern.permute.xlu0 %v2666_v2 }
 0x241   : > { %1119 = vperm.xlu0 %2381, %v2628_v0  }
 0x242   : > { %2366 = vset.pattern.permute.xlu1 %v2665_v1 }
 0x243   : > { %1398 = vperm.xlu1 %2366, %v2912_v44  }
 0x245   : > { %1124 = vperm.xlu0 %2381, %v2920_v48  }
 0x247   : > { %2367 = vset.pattern.permute.xlu1 %v2664_v25 }
 0x248   : > { %1202 = vperm.xlu1 %2367, %v2614_v53  }
 0x249   : > { %2502 = vset.pattern.permute.xlu0 %v2665_v1 }
 0x24c   : > { %2368 = vset.pattern.permute.xlu1 %v2663_v24 }
 0x24d   : > { %1298 = vperm.xlu1 %2368, %v2614_v53   ;;  %v1701_v53 = vld [vmem:[%s3500_s4 + $0x10] sm:$0xff] }
 0x251   : > { %1310 = vperm.xlu1 %2368, %v2916_v46  }
 0x255   : > { %2369 = vset.pattern.permute.xlu1 %v2665_v1 }
 0x256   : > { %1406 = vperm.xlu1 %2369, %v2916_v46  }
 0x25a   : > { %2370 = vset.pattern.permute.xlu1 %v2664_v25 }
 0x25b   : > { %1210 = vperm.xlu1 %2370, %v2951_v63  }
 0x25f   : > { %2371 = vset.pattern.permute.xlu1 %v2663_v24 }
 0x260   : > { %1306 = vperm.xlu1 %2371, %v2951_v63  }
 0x264   : > { %1318 = vperm.xlu1 %2371, %v2920_v48  }
 0x265   : > { %v1271_v4 = vpop.permute.xlu1 %1270  ;;  %v1175_v5 = vpop.permute.xlu0 %1174 }
 0x266   : > { %v1330_v17 = vmul.f32 %v1271_v4, %v2980_v6  ;;  %v1234_v27 = vmul.f32 %v1175_v5, %v2980_v6 }
 0x268   : > { %2372 = vset.pattern.permute.xlu1 %v2665_v1  ;;  %v1346_v35 = vadd.f32 %v1330_v17, %v2761_v14  ;;  %v1250_v36 = vadd.f32 %v1234_v27, %v2761_v14  ;;  %v1708_v17 = vld [vmem:[%s3500_s4 + $0x48] sm:$0xff] }
 0x269   : > { %1414 = vperm.xlu1 %2372, %v2920_v48   ;;  %v1700_v48 = vld [vmem:[%s3500_s4 + $0x8] sm:$0xff] }
 0x26a   : > { %v2983_v7 = vpop.permute.xlu1 %1366  ;;  %v1065_v8 = vpop.permute.xlu0 %1064  ;;  %v2297_v49 = vpack.c.bf16 %v1700_v48, %v1699_v47  ;;  %v1711_v47 = vld [vmem:[%s3500_s4 + $0x60] sm:$0xff] }
 0x26b   : > { %v2986_v9 = vmul.f32 %v1065_v8, %v2980_v6  ;;  %v1707_v8 = vld [vmem:[%s3500_s4 + $0x40] sm:$0xff] }
 0x26c   : > { %2298 = vmatprep.subr.bf16.mxu1 %v2297_v49 }
 0x26d   : > { %2373 = vset.pattern.permute.xlu1 %v2664_v25  ;;  %2300 = vmatpush3.bf16.msra.mxu1 %v2297_v49 }
 0x26e   : > { %1218 = vperm.xlu1 %2373, %v2628_v0  }
 0x26f   : > { %v1267_v13 = vpop.permute.xlu1 %1266  ;;  %v1171_v32 = vpop.permute.xlu0 %1170 }
 0x270   : > { %v1329_v33 = vmul.f32 %v1267_v13, %v2990_v12  ;;  %v1233_v34 = vmul.f32 %v1171_v32, %v2990_v12  ;;  %v2313_v32 = vpack.c.bf16 %v1708_v17, %v1707_v8  ;;  %v3172_v17 = vld [vmem:[%s2743_s18 + $0x10] sm:$0xff] }
 0x272   : > { %v1345_v10 = vadd.f32 %v1329_v33, %v2752_v11  ;;  %v1249_v37 = vadd.f32 %v1233_v34, %v2752_v11  ;;  %2374 = vset.pattern.permute.xlu1 %v2663_v24  ;;  %v3011_v11 = vsub.f32 %v2788_v20, %v2791_v21 }
 0x273   : > { %1314 = vperm.xlu1 %2374, %v2628_v0   ;;  %v1183_v38 = vpop.permute.xlu0 %1182  ;;  %v2309_v0 = vpack.c.bf16 %v1706_v62, %v1705_v60 }
 0x274   : > { %v1060_v39 = vpop.permute.xlu1 %1059  ;;  %v2382_v41 = vpack.i.bf16 %v1250_v36, %v1249_v37  ;;  %v2387_v43 = vpack.i.bf16 %v1346_v35, %v1345_v10  ;;  %v1236_v15 = vmul.f32 %v1183_v38, %v3039_v51  ;;  %v1709_v10 = vld [vmem:[%s3500_s4 + $0x50] sm:$0xff] }
 0x275   : > { %v3003_v44 = vmul.f32 %v1060_v39, %v2990_v12 }
 0x276   : > { %2383 = vrot.lane.b32.xlu0 %v2382_v41, %s2667_s24  ;;  %v3081_v27 = vadd.f32 %v1236_v15, %v2785_v19  ;;  %v3161_v15 = vld [vmem:[%s2743_s18 + $0x20] sm:$0xff] }
 0x277   : > { %1326 = vperm.xlu1 %2374, %v2925_v50   ;;  %v3007_v14 = vpop.permute.xlu0 %1190 }
 0x279   : > { %v1279_v45 = vpop.permute.xlu1 %1278 }
 0x27a   : > { %2388 = vrot.lane.b32.xlu0 %v2387_v43, %s2668_s25 }
 0x27b   : > { %2375 = vset.pattern.permute.xlu1 %v2665_v1  ;;  %v2301_v1 = vpack.c.bf16 %v1702_v54, %v1701_v53  ;;  %v1714_v53 = vld [vmem:[%s3500_s4 + $0x78] sm:$0xff] }
 0x27c   : > { %1422 = vperm.xlu1 %2375, %v2925_v50   ;;  %v1080_v52 = vpop.permute.xlu0 %1079 }
 0x27d   : > { %v3023_v20 = vmul.f32 %v1080_v52, %v3011_v11  ;;  %2302 = vmatprep.subr.bf16.mxu1 %v2301_v1  ;;  %v1713_v52 = vld [vmem:[%s3500_s4 + $0x70] sm:$0xff] }
 0x27e   : > { %v3025_v21 = vpop.permute.xlu1 %1374  ;;  %2304 = vmatpush3.bf16.msra.mxu1 %v2301_v1 }
 0x280   : > { %2376 = vset.pattern.permute.xlu1 %v2664_v25  ;;  %v1704_v25 = vld [vmem:[%s3500_s4 + $0x28] sm:$0xff] }
 0x281   : > { %1226 = vperm.xlu1 %2376, %v2956_v3   ;;  %v3035_v42 = vpop.permute.xlu0 %1198  ;;  %v2305_v58 = vpack.c.bf16 %v1704_v25, %v1703_v56  ;;  %v1426_v25 = vmul.f32 %v2983_v7, %v2980_v6  ;;  %v1428_v6 = vmul.f32 %v3025_v21, %v3039_v51 }
 0x283   : > { %v1075_v57 = vpop.permute.xlu1 %1074  ;;  %2306 = vmatprep.subr.bf16.mxu1 %v2305_v58 }
 0x284   : > { %v3052_v59 = vmul.f32 %v1075_v57, %v3039_v51  ;;  %2308 = vmatpush3.bf16.msra.mxu1 %v2305_v58  ;;  %v3142_v57 = vsub.f32 %v2802_v22, %v2805_v23  ;;  %v3155_v22 = vld [vmem:[%s2743_s18] sm:$0xff] }
 0x285   : > { %2377 = vset.pattern.permute.xlu1 %v2663_v24  ;;  %v1207_v30 = vpop.permute.xlu0 %1206  ;;  %2310 = vmatprep.subr.bf16.mxu1 %v2309_v0 }
 0x286   : > { %1322 = vperm.xlu1 %2377, %v2956_v3   ;;  %v3061_v31 = vmul.f32 %v1207_v30, %v3043_v55  ;;  %v3147_v30 = vld [vmem:[%s2743_s18 + $0x8] sm:$0xff]  ;;  %v1238_v62 = vmul.f32 %v3007_v14, %v3142_v57 }
 0x287   : > { %v1442_v60 = vadd.f32 %v3147_v30, %v1426_v25 }
 0x288   : > { %v1179_v24 = vpop.permute.xlu1 %1178  ;;  %2312 = vmatpush3.bf16.msra.mxu1 %v2309_v0  ;;  %v1254_v21 = vadd.f32 %v1238_v62, %v2805_v23 }
 0x289   : > { %v1235_v4 = vmul.f32 %v1179_v24, %v3056_v18  ;;  %v3071_v5 = vpop.permute.xlu0 %1214  ;;  %2314 = vmatprep.subr.bf16.mxu1 %v2313_v32 }
 0x28a   : > { %2378 = vset.pattern.permute.xlu1 %v2666_v2  ;;  %v1332_v2 = vmul.f32 %v1279_v45, %v3039_v51  ;;  %v3168_v51 = vld [vmem:[%s2743_s18 + $0x18] sm:$0xff] }
 0x28b   : > { %v3084_v13 = vadd.f32 %v1235_v4, %v2771_v16  ;;  %1084 = vperm.xlu1 %2378, %v2898_v26   ;;  %v1710_v26 = vld [vmem:[%s3500_s4 + $0x58] sm:$0xff]  ;;  %v1444_v8 = vadd.f32 %v3168_v51, %v1428_v6 }
 0x28c   : > { %2316 = vmatpush3.bf16.msra.mxu1 %v2313_v32  ;;  %v2317_v37 = vpack.c.bf16 %v1710_v26, %v1709_v10  ;;  %v3101_v38 = vadd.f32 %v1332_v2, %v2785_v19  ;;  %v1712_v19 = vld [vmem:[%s3500_s4 + $0x68] sm:$0xff] }
 0x28d   : > { %v1275_v33 = vpop.permute.xlu1 %1274  ;;  %v3088_v34 = vpop.permute.xlu0 %1222  ;;  %v2397_v35 = vpack.i.bf16 %v3081_v27, %v3084_v13  ;;  %v2321_v48 = vpack.c.bf16 %v1712_v19, %v1711_v47  ;;  %v3183_v10 = vld [vmem:[%s2743_s18 + $0x28] sm:$0xff]  ;;  %v2637_v19 = vld [vmem:[%s2737_s15 + $0x38] sm:$0xff] }
 0x28e   : > { %v1331_v36 = vmul.f32 %v1275_v33, %v3056_v18  ;;  %2318 = vmatprep.subr.bf16.mxu1 %v2317_v37 }
 0x28f   : > { %1089 = vperm.xlu1 %2378, %v2945_v61  }
 0x290   : > { %v3104_v39 = vadd.f32 %v1331_v36, %v2771_v16  ;;  %2320 = vmatpush3.bf16.msra.mxu1 %v2317_v37  ;;  %v3118_v16 = vsub.f32 %v2818_v28, %v2821_v29 }
 0x291   : > { %v3106_v41 = vpop.permute.xlu0 %1230  ;;  %2322 = vmatprep.subr.bf16.mxu1 %v2321_v48 }
 0x292   : > { %v1070_v43 = vpop.permute.xlu1 %1069  ;;  %v2402_v45 = vpack.i.bf16 %v3101_v38, %v3104_v39  ;;  %v2639_v38 = vld [vmem:[%s2737_s15 + $0x30] sm:$0xff] }
 0x293   : > { %v3121_v61 = vmul.f32 %v1070_v43, %v3056_v18  ;;  %1094 = vperm.xlu1 %2378, %v2908_v40   ;;  %v2325_v40 = vpack.c.bf16 %v1714_v53, %v1713_v52  ;;  %v3207_v39 = vld [vmem:[%s2743_s18 + $0x30] sm:$0xff] }
 0x294   : > { %2324 = vmatpush3.bf16.msra.mxu1 %v2321_v48  ;;  %v3198_v48 = vld [vmem:[%s2743_s18 + $0x38] sm:$0xff] }
 0x295   : > { %2326 = vmatprep.subr.bf16.mxu1 %v2325_v40 }
 0x296   : > { %v1100_v49 = vpop.permute.xlu0 %1099 }
 0x297   : > { %v1287_v28 = vpop.permute.xlu1 %1286  ;;  %v3131_v29 = vmul.f32 %v1100_v49, %v3118_v16  ;;  %1109 = vperm.xlu1 %2378, %v2951_v63   ;;  %v3201_v49 = vsub.f32 %v2637_v19, %v3198_v48 }
 0x298   : > { %2328 = vmatpush3.bf16.msra.mxu1 %v2325_v40  ;;  %v1334_v14 = vmul.f32 %v1287_v28, %v3142_v57 }
 0x299   : > { %v1240_v40 = vmul.f32 %v3035_v42, %v3201_v49 }
 0x29a   : > { %v1105_v54 = vpop.permute.xlu0 %1104  ;;  %v1350_v26 = vadd.f32 %v3183_v10, %v1334_v14  ;;  %v3232_v14 = vld [vmem:[%s2743_s18 + $0x60] sm:$0xff] }
 0x29b   : > { %v3135_v1 = vmul.f32 %v1105_v54, %v3043_v55  ;;  %1114 = vperm.xlu1 %2378, %v2916_v46  }
 0x29c   : > { %v1383_v56 = vpop.permute.xlu1 %1382 }
 0x29d   : > { %v1430_v43 = vmul.f32 %v1383_v56, %v3142_v57 }
 0x29f   : > { %v1363_v63 = vpop.permute.xlu0 %1362  ;;  %1134 = vperm.xlu1 %2378, %v2925_v50  }
 0x2a0   : > { %v1425_v58 = vmul.f32 %v1363_v63, %v2990_v12  ;;  %v1256_v63 = vadd.f32 %v3198_v48, %v1240_v40 }
 0x2a1   : > { %v1187_v46 = vpop.permute.xlu1 %1186 }
 0x2a2   : > { %v1441_v7 = vadd.f32 %v3155_v22, %v1425_v58  ;;  %v1237_v50 = vmul.f32 %v1187_v46, %v3011_v11 }
 0x2a3   : > { %v1371_v12 = vpop.permute.xlu0 %1370  ;;  %1129 = vperm.xlu1 %2378, %v2956_v3  }
 0x2a4   : > { %v1253_v0 = vadd.f32 %v3161_v15, %v1237_v50  ;;  %v1427_v24 = vmul.f32 %v1371_v12, %v3056_v18  ;;  %v2392_v4 = vpack.i.bf16 %v1442_v60, %v1441_v7 }
 0x2a6   : > { %v1443_v3 = vadd.f32 %v3172_v17, %v1427_v24  ;;  %v1283_v32 = vpop.permute.xlu1 %1282  ;;  %2393 = vrot.lane.b32.xlu0 %v2392_v4, %s2669_s19  ;;  %v2412_v33 = vpack.i.bf16 %v1254_v21, %v1253_v0  ;;  %v2641_v4 = vld [vmem:[%s2737_s15 + $0x60] sm:$0xff] }
 0x2a7   : > { %v1333_v18 = vmul.f32 %v1283_v32, %v3011_v11  ;;  %v1379_v2 = vpop.permute.xlu0 %1378  ;;  %2398 = vrot.lane.b32.xlu1 %v2397_v35, %s2667_s24  ;;  %v1446_v35 = vadd.f32 %v3183_v10, %v1430_v43  ;;  %v3235_v21 = vsub.f32 %v2641_v4, %v3232_v14  ;;  %v3247_v43 = vld [vmem:[%s2743_s18 + $0x40] sm:$0xff] }
 0x2a8   : > { %v1429_v23 = vmul.f32 %v1379_v2, %v3011_v11  ;;  %v2407_v36 = vpack.i.bf16 %v1444_v8, %v1443_v3 }
 0x2a9   : > { %v1349_v37 = vadd.f32 %v3161_v15, %v1333_v18 }
 0x2aa   : > { %v1295_v47 = vpop.permute.xlu1 %1294  ;;  %2413 = vrot.lane.b32.xlu0 %v2412_v33, %s2667_s24  ;;  %v1445_v13 = vadd.f32 %v3161_v15, %v1429_v23 }
 0x2ab   : > { %v1387_v27 = vpop.permute.xlu0 %1386  ;;  %2403 = vrot.lane.b32.xlu1 %v2402_v45, %s2668_s25  ;;  %v2417_v11 = vpack.i.bf16 %v1350_v26, %v1349_v37  ;;  %v3210_v45 = vsub.f32 %v2639_v38, %v3207_v39  ;;  %v1336_v46 = vmul.f32 %v1295_v47, %v3201_v49 }
 0x2ac   : > { %v2422_v28 = vpack.i.bf16 %v1446_v35, %v1445_v13 }
 0x2ad   : > { %v1352_v12 = vadd.f32 %v3198_v48, %v1336_v46  ;;  %v1431_v0 = vmul.f32 %v1387_v27, %v3210_v45  ;;  %v3251_v27 = vld [vmem:[%s2743_s18 + $0x48] sm:$0xff] }
 0x2ae   : > { %2418 = vrot.lane.b32.xlu0 %v2417_v11, %s2668_s25 }
 0x2af   : > { %v1391_v52 = vpop.permute.xlu1 %1390  ;;  %2408 = vrot.lane.b32.xlu1 %v2407_v36, %s2669_s19  ;;  %v1395_v53 = vpop.permute.xlu0 %1394  ;;  %v1447_v18 = vadd.f32 %v3207_v39, %v1431_v0 }
 0x2b0   : > { %v1432_v7 = vmul.f32 %v1391_v52, %v3201_v49  ;;  %v1433_v23 = vmul.f32 %v1395_v53, %v3118_v16  ;;  %v1258_v52 = vadd.f32 %v3251_v27, %v3061_v31  ;;  %v2645_v31 = vld [vmem:[%s2737_s15 + $0x58] sm:$0xff] }
 0x2b2   : > { %2423 = vrot.lane.b32.xlu0 %v2422_v28, %s2669_s19  ;;  %v1448_v3 = vadd.f32 %v3198_v48, %v1432_v7  ;;  %v1449_v47 = vadd.f32 %v3247_v43, %v1433_v23  ;;  %v3274_v7 = vld [vmem:[%s2743_s18 + $0x50] sm:$0xff] }
 0x2b3   : > { %v3214_v54 = vpop.permute.xlu0 %1402 }
 0x2b4   : > { %v1195_v56 = vpop.permute.xlu1 %1194  ;;  %v2437_v26 = vpack.i.bf16 %v1448_v3, %v1447_v18 }
 0x2b5   : > { %v1239_v25 = vmul.f32 %v1195_v56, %v3210_v45 }
 0x2b7   : > { %v1255_v58 = vadd.f32 %v3207_v39, %v1239_v25  ;;  %v3219_v60 = vpop.permute.xlu0 %1410 }
 0x2b9   : > { %v1291_v62 = vpop.permute.xlu1 %1290  ;;  %v2427_v6 = vpack.i.bf16 %v1256_v63, %v1255_v58 }
 0x2ba   : > { %v1335_v42 = vmul.f32 %v1291_v62, %v3210_v45  ;;  %v3266_v62 = vld [vmem:[%s2743_s18 + $0x58] sm:$0xff] }
 0x2bb   : > { %2428 = vrot.lane.b32.xlu1 %v2427_v6, %s2667_s24  ;;  %v3225_v50 = vpop.permute.xlu0 %1418 }
 0x2bc   : > { %v1351_v24 = vadd.f32 %v3207_v39, %v1335_v42 }
 0x2bd   : > { %v1303_v8 = vpop.permute.xlu1 %1302 }
 0x2be   : > { %v2432_v32 = vpack.i.bf16 %v1352_v12, %v1351_v24  ;;  %v1338_v28 = vmul.f32 %v1303_v8, %v3043_v55 }
 0x2c0   : > { %2433 = vrot.lane.b32.xlu1 %v2432_v32, %s2668_s25  ;;  %v1120_v2 = vpop.permute.xlu0 %1119  ;;  %v1354_v25 = vadd.f32 %v3251_v27, %v1338_v28 }
 0x2c1   : > { %v3242_v33 = vmul.f32 %v1120_v2, %v3235_v21 }
 0x2c2   : > { %v1399_v36 = vpop.permute.xlu1 %1398 }
 0x2c3   : > { %v1434_v37 = vmul.f32 %v1399_v36, %v3043_v55  ;;  %v3269_v55 = vsub.f32 %v2645_v31, %v3266_v62 }
 0x2c4   : > { %2438 = vrot.lane.b32.xlu1 %v2437_v26, %s2669_s19 }
 0x2c5   : > { %v1450_v11 = vadd.f32 %v3251_v27, %v1434_v37  ;;  %v1244_v12 = vmul.f32 %v3071_v5, %v3269_v55 }
 0x2c7   : > { %v1203_v13 = vpop.permute.xlu1 %1202  ;;  %v2452_v35 = vpack.i.bf16 %v1450_v11, %v1449_v47  ;;  %v1260_v8 = vadd.f32 %v3266_v62, %v1244_v12 }
 0x2c8   : > { %v1241_v19 = vmul.f32 %v1203_v13, %v3118_v16 }
 0x2ca   : > { %v1257_v53 = vadd.f32 %v3247_v43, %v1241_v19  ;;  %v3298_v19 = vld [vmem:[%s2743_s18 + $0x68] sm:$0xff] }
 0x2cc   : > { %v1299_v38 = vpop.permute.xlu1 %1298  ;;  %v2442_v40 = vpack.i.bf16 %v1258_v52, %v1257_v53 }
 0x2cd   : > { %v1337_v56 = vmul.f32 %v1299_v38, %v3118_v16  ;;  %v2647_v16 = vld [vmem:[%s2737_s15 + $0x50] sm:$0xff] }
 0x2ce   : > { %2443 = vrot.lane.b32.xlu0 %v2442_v40, %s2667_s24  ;;  %v3277_v42 = vsub.f32 %v2647_v16, %v3274_v7 }
 0x2cf   : > { %v1353_v63 = vadd.f32 %v3247_v43, %v1337_v56 }
 0x2d0   : > { %v1311_v58 = vpop.permute.xlu1 %1310  ;;  %v1435_v3 = vmul.f32 %v3214_v54, %v3277_v42 }
 0x2d1   : > { %v2447_v46 = vpack.i.bf16 %v1354_v25, %v1353_v63  ;;  %v1340_v18 = vmul.f32 %v1311_v58, %v3269_v55  ;;  %v1437_v63 = vmul.f32 %v3219_v60, %v3235_v21 }
 0x2d2   : > { %v1451_v26 = vadd.f32 %v3274_v7, %v1435_v3  ;;  %v2651_v3 = vld [vmem:[%s2737_s15 + $0x78] sm:$0xff] }
 0x2d3   : > { %2448 = vrot.lane.b32.xlu0 %v2447_v46, %s2668_s25  ;;  %v1356_v37 = vadd.f32 %v3266_v62, %v1340_v18  ;;  %v1453_v12 = vadd.f32 %v3232_v14, %v1437_v63  ;;  %v3349_v63 = vpop.permute.xlu0 %1124 }
 0x2d5   : > { %v1407_v6 = vpop.permute.xlu1 %1406 }
 0x2d6   : > { %v1436_v24 = vmul.f32 %v1407_v6, %v3269_v55 }
 0x2d7   : > { %2453 = vrot.lane.b32.xlu0 %v2452_v35, %s2669_s19  ;;  %v2649_v35 = vld [vmem:[%s2737_s15 + $0x68] sm:$0xff] }
 0x2d8   : > { %v1452_v2 = vadd.f32 %v3266_v62, %v1436_v24  ;;  %v3301_v52 = vsub.f32 %v2649_v35, %v3298_v19 }
 0x2da   : > { %v1211_v0 = vpop.permute.xlu1 %1210  ;;  %v2467_v11 = vpack.i.bf16 %v1452_v2, %v1451_v26  ;;  %v1246_v28 = vmul.f32 %v3088_v34, %v3301_v52  ;;  %v2653_v2 = vld [vmem:[%s2737_s15 + $0x70] sm:$0xff] }
 0x2db   : > { %v1243_v4 = vmul.f32 %v1211_v0, %v3277_v42 }
 0x2dc   : > { %v1262_v25 = vadd.f32 %v3298_v19, %v1246_v28 }
 0x2dd   : > { %v1259_v32 = vadd.f32 %v3274_v7, %v1243_v4 }
 0x2df   : > { %v1307_v23 = vpop.permute.xlu1 %1306  ;;  %v2457_v5 = vpack.i.bf16 %v1260_v8, %v1259_v32  ;;  %v3322_v32 = vld [vmem:[%s2743_s18 + $0x78] sm:$0xff] }
 0x2e0   : > { %v1339_v36 = vmul.f32 %v1307_v23, %v3277_v42  ;;  %v3329_v23 = vld [vmem:[%s2743_s18 + $0x70] sm:$0xff] }
 0x2e1   : > { %2458 = vrot.lane.b32.xlu1 %v2457_v5, %s2667_s24  ;;  %v3332_v5 = vsub.f32 %v2653_v2, %v3329_v23 }
 0x2e2   : > { %v1355_v54 = vadd.f32 %v3274_v7, %v1339_v36 }
 0x2e3   : > { %v1319_v47 = vpop.permute.xlu1 %1318 }
 0x2e4   : > { %v2462_v13 = vpack.i.bf16 %v1356_v37, %v1355_v54  ;;  %v1342_v46 = vmul.f32 %v1319_v47, %v3301_v52 }
 0x2e5   : > { %2468 = vrot.lane.b32.xlu1 %v2467_v11, %s2669_s19  ;;  %v1439_v11 = vmul.f32 %v3225_v50, %v3332_v5 }
 0x2e6   : > { %2463 = vrot.lane.b32.xlu0 %v2462_v13, %s2668_s25  ;;  %v1358_v60 = vadd.f32 %v3298_v19, %v1342_v46 }
 0x2e8   : > { %v1415_v53 = vpop.permute.xlu1 %1414 }
 0x2e9   : > { %v1438_v40 = vmul.f32 %v1415_v53, %v3301_v52 }
 0x2eb   : > { %v1454_v31 = vadd.f32 %v3298_v19, %v1438_v40  ;;  %v1455_v40 = vadd.f32 %v3329_v23, %v1439_v11 }
 0x2ed   : > { %v1219_v38 = vpop.permute.xlu1 %1218  ;;  %v2482_v4 = vpack.i.bf16 %v1454_v31, %v1453_v12  ;;  %v2384_v31 = vpop.permute.xlu0 %2383 }
 0x2ee   : > { %v1245_v56 = vmul.f32 %v1219_v38, %v3235_v21  ;;  %v2386_v12 = vunpack.i.h.bf16 %v2384_v31 }
 0x2f0   : > { %v1261_v58 = vadd.f32 %v3232_v14, %v1245_v56 }
 0x2f2   : > { %v1315_v6 = vpop.permute.xlu1 %1314  ;;  %v2472_v34 = vpack.i.bf16 %v1262_v25, %v1261_v58 }
 0x2f3   : > { %v1341_v16 = vmul.f32 %v1315_v6, %v3235_v21  ;;  %v3325_v21 = vsub.f32 %v2651_v3, %v3322_v32  ;;  %v1153_v3 = vadd.f32 %v3155_v22, %v3003_v44 }
 0x2f4   : > { %2473 = vrot.lane.b32.xlu0 %v2472_v34, %s2667_s24 }
 0x2f5   : > { %v1357_v0 = vadd.f32 %v3232_v14, %v1341_v16  ;;  %v1248_v36 = vmul.f32 %v3106_v41, %v3325_v21  ;;  %v2389_v16 = vpop.permute.xlu0 %2388 }
 0x2f6   : > { %v1327_v24 = vpop.permute.xlu1 %1326 }
 0x2f7   : > { %v2477_v8 = vpack.i.bf16 %v1358_v60, %v1357_v0  ;;  %v1264_v47 = vadd.f32 %v3322_v32, %v1248_v36  ;;  %v1344_v35 = vmul.f32 %v1327_v24, %v3325_v21  ;;  %v2385_v60 = vunpack.i.l.bf16 %v2384_v31 }
 0x2f8   : > { %2483 = vrot.lane.b32.xlu0 %v2482_v4, %s2669_s19  ;;  %v2391_v0 = vunpack.i.h.bf16 %v2389_v16  ;;  %v2390_v24 = vunpack.i.l.bf16 %v2389_v16  ;;  %v1157_v16 = vadd.f32 %v3161_v15, %v3023_v20 }
 0x2f9   : > { %2478 = vrot.lane.b32.xlu1 %v2477_v8, %s2668_s25  ;;  %v1360_v56 = vadd.f32 %v3322_v32, %v1344_v35  ;;  %v1154_v8 = vadd.f32 %v3147_v30, %v2986_v9 }
 0x2fb   : > { %v1423_v18 = vpop.permute.xlu1 %1422  ;;  %v1650_v2 = vsel %vm313_vm0, %v1154_v8, %v2386_v12 }
 0x2fc   : > { %v1440_v37 = vmul.f32 %v1423_v18, %v3325_v21 }
 0x2fe   : > { %v1456_v53 = vadd.f32 %v3322_v32, %v1440_v37  ;;  %v1649_v37 = vsel %vm313_vm0, %v1153_v3, %v2385_v60 }
 0x2ff   : > { %v1666_v11 = vsel %vm1665_vm1, %v1649_v37, %v2390_v24 }
 0x300   : > { %v1227_v26 = vpop.permute.xlu1 %1226  ;;  %v2497_v50 = vpack.i.bf16 %v1456_v53, %v1455_v40 }
 0x301   : > { %v1247_v54 = vmul.f32 %v1227_v26, %v3332_v5 }
 0x303   : > { %v1263_v13 = vadd.f32 %v3329_v23, %v1247_v54  ;;  %v1667_v54 = vsel %vm1665_vm1, %v1650_v2, %v2391_v0 }
 0x305   : > { %v2487_v28 = vpack.i.bf16 %v1264_v47, %v1263_v13  ;;  %v1323_v38 = vpop.permute.xlu1 %1322 }
 0x306   : > { %v1343_v41 = vmul.f32 %v1323_v38, %v3332_v5 }
 0x307   : > { %2488 = vrot.lane.b32.xlu1 %v2487_v28, %s2667_s24 }
 0x308   : > { %v1359_v25 = vadd.f32 %v3329_v23, %v1343_v41 }
 0x30a   : > { %v1085_v58 = vpop.permute.xlu1 %1084  ;;  %v2492_v46 = vpack.i.bf16 %v1360_v56, %v1359_v25 }
 0x30b   : > { %2498 = vrot.lane.b32.xlu1 %v2497_v50, %s2669_s19  ;;  %v1156_v50 = vadd.f32 %v3168_v51, %v3052_v59  ;;  %v1142_v12 = vmul.f32 %v1085_v58, %v3142_v57 }
 0x30c   : > { %2493 = vrot.lane.b32.xlu0 %v2492_v46, %s2668_s25  ;;  %v1155_v46 = vadd.f32 %v3172_v17, %v3121_v61 }
 0x30d   : > { %v1158_v15 = vadd.f32 %v3183_v10, %v1142_v12 }
 0x30e   : > { %v3353_v6 = vpop.permute.xlu1 %1089 }
 0x312   : > { %v3355_v34 = vpop.permute.xlu1 %1094 }
 0x316   : > { %v3357_v4 = vpop.permute.xlu1 %1109 }
 0x318   : > { %v2394_v18 = vpop.permute.xlu0 %2393 }
 0x319   : > { %v2396_v36 = vunpack.i.h.bf16 %v2394_v18  ;;  %v2395_v26 = vunpack.i.l.bf16 %v2394_v18 }
 0x31a   : > { %v3366_v47 = vpop.permute.xlu1 %1114 }
 0x31b   : > { %v1683_v9 = vsel %vm1682_vm2, %v1666_v11, %v2395_v26  ;;  %v1684_v30 = vsel %vm1682_vm2, %v1667_v54, %v2396_v36 }
 0x31c   : > { %2249 = vmatprep.mubr.f32.mxu1 %v1683_v9  ;;  %v2414_v22 = vpop.permute.xlu0 %2413  ;;  %v1143_v9 = vmul.f32 %v3353_v6, %v3210_v45 }
 0x31d   : > { %2250 = vmatmul.mubr.f32.vlgmr.msra.gmra.mrb[16].mxu1 %v1684_v30  ;;  %v2415_v31 = vunpack.i.l.bf16 %v2414_v22  ;;  %v2416_v36 = vunpack.i.h.bf16 %v2414_v22  ;;  %v1144_v30 = vmul.f32 %v3355_v34, %v3201_v49 }
 0x31e   : > { %v3371_v44 = vpop.permute.xlu1 %1134 }
 0x31f   : > { %v1653_v57 = vsel %vm313_vm0, %v1157_v16, %v2415_v31  ;;  %v1654_v11 = vsel %vm313_vm0, %v1158_v15, %v2416_v36 }
 0x320   : > { %v2419_v35 = vpop.permute.xlu0 %2418 }
 0x321   : > { %v2420_v60 = vunpack.i.l.bf16 %v2419_v35  ;;  %v2421_v51 = vunpack.i.h.bf16 %v2419_v35 }
 0x322   : > { %v3373_v13 = vpop.permute.xlu1 %1129 }
 0x323   : > { %v1670_v37 = vsel %vm1665_vm1, %v1653_v57, %v2420_v60  ;;  %v1671_v22 = vsel %vm1665_vm1, %v1654_v11, %v2421_v51 }
 0x324   : > { %v2424_v38 = vpop.permute.xlu0 %2423 }
 0x325   : > { %v2425_v0 = vunpack.i.l.bf16 %v2424_v38  ;;  %v2426_v58 = vunpack.i.h.bf16 %v2424_v38 }
 0x326   : > { %v2399_v53 = vpop.permute.xlu1 %2398 }
 0x327   : > { %v2401_v41 = vunpack.i.h.bf16 %v2399_v53  ;;  %v2400_v40 = vunpack.i.l.bf16 %v2399_v53  ;;  %v1687_v54 = vsel %vm1682_vm2, %v1670_v37, %v2425_v0  ;;  %v1688_v35 = vsel %vm1682_vm2, %v1671_v22, %v2426_v58 }
 0x329   : > { %v1651_v18 = vsel %vm313_vm0, %v1155_v46, %v2400_v40  ;;  %v1652_v2 = vsel %vm313_vm0, %v1156_v50, %v2401_v41  ;;  %v1159_v40 = vadd.f32 %v3207_v39, %v1143_v9 }
 0x32a   : > { %v2404_v28 = vpop.permute.xlu1 %2403 }
 0x32b   : > { %v2406_v56 = vunpack.i.h.bf16 %v2404_v28  ;;  %v2405_v25 = vunpack.i.l.bf16 %v2404_v28 }
 0x32d   : > { %v1668_v59 = vsel %vm1665_vm1, %v1651_v18, %v2405_v25  ;;  %v1669_v61 = vsel %vm1665_vm1, %v1652_v2, %v2406_v56  ;;  %v1160_v56 = vadd.f32 %v3198_v48, %v1144_v30 }
 0x32e   : > { %v2409_v24 = vpop.permute.xlu1 %2408 }
 0x32f   : > { %v2411_v8 = vunpack.i.h.bf16 %v2409_v24  ;;  %v2410_v3 = vunpack.i.l.bf16 %v2409_v24 }
 0x331   : > { %v1685_v17 = vsel %vm1682_vm2, %v1668_v59, %v2410_v3  ;;  %v1686_v20 = vsel %vm1682_vm2, %v1669_v61, %v2411_v8  ;;  %v1161_v8 = vadd.f32 %v3247_v43, %v3131_v29  ;;  %v1162_v3 = vadd.f32 %v3251_v27, %v3135_v1 }
 0x332   : > { %v2429_v26 = vpop.permute.xlu1 %2428  ;;  %2252 = vmatprep.mubr.f32.mxu1 %v1685_v17  ;;  %v1147_v1 = vmul.f32 %v3357_v4, %v3277_v42  ;;  %v1148_v43 = vmul.f32 %v3366_v47, %v3269_v55 }
 0x333   : > { %2253 = vmatmul.mubr.f32.gmra.mrb[18].mxu1 %v1686_v20  ;;  %v2431_v53 = vunpack.i.h.bf16 %v2429_v26  ;;  %v2430_v28 = vunpack.i.l.bf16 %v2429_v26 }
 0x334   : > { %2255 = vmatprep.mubr.f32.mxu1 %v1687_v54  ;;  %v1163_v26 = vadd.f32 %v3274_v7, %v1147_v1  ;;  %v1164_v37 = vadd.f32 %v3266_v62, %v1148_v43  ;;  %v1150_v7 = vmul.f32 %v3349_v63, %v3301_v52 }
 0x335   : > { %v1655_v6 = vsel %vm313_vm0, %v1159_v40, %v2430_v28  ;;  %v1656_v49 = vsel %vm313_vm0, %v1160_v56, %v2431_v53 }
 0x336   : > { %v2434_v10 = vpop.permute.xlu1 %2433  ;;  %v1166_v40 = vadd.f32 %v3298_v19, %v1150_v7  ;;  %v1151_v19 = vmul.f32 %v3373_v13, %v3332_v5 }
 0x337   : > { %2256 = vmatmul.mubr.f32.gmra.mrb[20].mxu1 %v1688_v35  ;;  %v2436_v38 = vunpack.i.h.bf16 %v2434_v10  ;;  %v2435_v41 = vunpack.i.l.bf16 %v2434_v10 }
 0x339   : > { %v1672_v34 = vsel %vm1665_vm1, %v1655_v6, %v2435_v41  ;;  %v1673_v46 = vsel %vm1665_vm1, %v1656_v49, %v2436_v38  ;;  %v1165_v41 = vadd.f32 %v3232_v14, %v3242_v33  ;;  %v1152_v33 = vmul.f32 %v3371_v44, %v3325_v21 }
 0x33a   : > { %v2439_v25 = vpop.permute.xlu1 %2438 }
 0x33b   : > { %v2441_v50 = vunpack.i.h.bf16 %v2439_v25  ;;  %v2440_v45 = vunpack.i.l.bf16 %v2439_v25 }
 0x33d   : > { %v1689_v31 = vsel %vm1682_vm2, %v1672_v34, %v2440_v45  ;;  %v1690_v16 = vsel %vm1682_vm2, %v1673_v46, %v2441_v50 }
 0x33e   : > { %2258 = vmatprep.mubr.f32.mxu1 %v1689_v31 }
 0x33f   : > { %2259 = vmatmul.mubr.f32.gmra.mrb[22].mxu1 %v1690_v16 }
 0x340   : > { %v2444_v39 = vpop.permute.xlu0 %2443 }
 0x341   : > { %v2446_v48 = vunpack.i.h.bf16 %v2444_v39  ;;  %v2445_v60 = vunpack.i.l.bf16 %v2444_v39 }
 0x343   : > { %v1657_v59 = vsel %vm313_vm0, %v1161_v8, %v2445_v60  ;;  %v1658_v61 = vsel %vm313_vm0, %v1162_v3, %v2446_v48  ;;  %v1168_v48 = vadd.f32 %v3322_v32, %v1152_v33  ;;  %v1167_v60 = vadd.f32 %v3329_v23, %v1151_v19  ;;  %v2026_v23 = vld [vmem:[%s3501_s5] ss:$0 sm:$0xff] }
 0x345   : > { %v2449_v12 = vpop.permute.xlu0 %2448 }
 0x346   : > { %v2451_v0 = vunpack.i.h.bf16 %v2449_v12  ;;  %v2450_v24 = vunpack.i.l.bf16 %v2449_v12 }
 0x348   : > { %v1674_v51 = vsel %vm1665_vm1, %v1657_v59, %v2450_v24  ;;  %v1675_v17 = vsel %vm1665_vm1, %v1658_v61, %v2451_v0 }
 0x349   : > { %v2454_v18 = vpop.permute.xlu0 %2453 }
 0x34a   : > { %v2456_v2 = vunpack.i.h.bf16 %v2454_v18  ;;  %v2455_v36 = vunpack.i.l.bf16 %v2454_v18 }
 0x34c   : > { %v1691_v20 = vsel %vm1682_vm2, %v1674_v51, %v2455_v36  ;;  %v1692_v57 = vsel %vm1682_vm2, %v1675_v17, %v2456_v2 }
 0x34d   : > { %2261 = vmatprep.mubr.f32.mxu1 %v1691_v20 }
 0x34e   : > { %2262 = vmatmul.mubr.f32.gmra.mrb[24].mxu1 %v1692_v57 }
 0x353   : > { %v2459_v29 = vpop.permute.xlu1 %2458 }
 0x354   : > { %v2461_v27 = vunpack.i.h.bf16 %v2459_v29  ;;  %v2460_v15 = vunpack.i.l.bf16 %v2459_v29 }
 0x356   : > { %v1659_v10 = vsel %vm313_vm0, %v1163_v26, %v2460_v15  ;;  %v1660_v35 = vsel %vm313_vm0, %v1164_v37, %v2461_v27 }
 0x357   : > { %v2469_v58 = vpop.permute.xlu1 %2468 }
 0x358   : > { %v2464_v54 = vpop.permute.xlu0 %2463  ;;  %v2471_v30 = vunpack.i.h.bf16 %v2469_v58  ;;  %v2470_v22 = vunpack.i.l.bf16 %v2469_v58 }
 0x359   : > { %v2466_v11 = vunpack.i.h.bf16 %v2464_v54  ;;  %v2465_v9 = vunpack.i.l.bf16 %v2464_v54 }
 0x35b   : > { %v1676_v42 = vsel %vm1665_vm1, %v1659_v10, %v2465_v9  ;;  %v1677_v55 = vsel %vm1665_vm1, %v1660_v35, %v2466_v11 }
 0x35c   : > { %v1693_v4 = vsel %vm1682_vm2, %v1676_v42, %v2470_v22  ;;  %v1694_v47 = vsel %vm1682_vm2, %v1677_v55, %v2471_v30 }
 0x35d   : > { %2264 = vmatprep.mubr.f32.mxu1 %v1693_v4 }
 0x35e   : > { %2265 = vmatmul.mubr.f32.gmra.mrb[26].mxu1 %v1694_v47 }
 0x366   : > { %v2474_v62 = vpop.permute.xlu0 %2473 }
 0x367   : > { %v2476_v53 = vunpack.i.h.bf16 %v2474_v62  ;;  %v2475_v28 = vunpack.i.l.bf16 %v2474_v62 }
 0x369   : > { %v1661_v49 = vsel %vm313_vm0, %v1165_v41, %v2475_v28  ;;  %v1662_v34 = vsel %vm313_vm0, %v1166_v40, %v2476_v53 }
 0x36a   : > { %v2484_v38 = vpop.permute.xlu0 %2483 }
 0x36b   : > { %v2479_v56 = vpop.permute.xlu1 %2478  ;;  %v2486_v45 = vunpack.i.h.bf16 %v2484_v38  ;;  %v2485_v6 = vunpack.i.l.bf16 %v2484_v38 }
 0x36c   : > { %v2481_v25 = vunpack.i.h.bf16 %v2479_v56  ;;  %v2480_v50 = vunpack.i.l.bf16 %v2479_v56 }
 0x36e   : > { %v1678_v46 = vsel %vm1665_vm1, %v1661_v49, %v2480_v50  ;;  %v1679_v52 = vsel %vm1665_vm1, %v1662_v34, %v2481_v25 }
 0x36f   : > { %v1695_v63 = vsel %vm1682_vm2, %v1678_v46, %v2485_v6  ;;  %v1696_v31 = vsel %vm1682_vm2, %v1679_v52, %v2486_v45 }
 0x370   : > { %2267 = vmatprep.mubr.f32.mxu1 %v1695_v63 }
 0x371   : > { %2268 = vmatmul.mubr.f32.gmra.mrb[28].mxu1 %v1696_v31 }
 0x379   : > { %v2489_v14 = vpop.permute.xlu1 %2488 }
 0x37a   : > { %v2491_v16 = vunpack.i.h.bf16 %v2489_v14  ;;  %v2490_v39 = vunpack.i.l.bf16 %v2489_v14 }
 0x37c   : > { %v1663_v2 = vsel %vm313_vm0, %v1167_v60, %v2490_v39  ;;  %v1664_v21 = vsel %vm313_vm0, %v1168_v48, %v2491_v16 }
 0x37d   : > { %v2499_v12 = vpop.permute.xlu1 %2498 }
 0x37e   : > { %v2494_v0 = vpop.permute.xlu0 %2493  ;;  %v2501_v3 = vunpack.i.h.bf16 %v2499_v12  ;;  %v2500_v18 = vunpack.i.l.bf16 %v2499_v12 }
 0x37f   : > { %v2496_v24 = vunpack.i.h.bf16 %v2494_v0  ;;  %v2495_v8 = vunpack.i.l.bf16 %v2494_v0 }
 0x381   : > { %v1680_v44 = vsel %vm1665_vm1, %v1663_v2, %v2495_v8  ;;  %v1681_v5 = vsel %vm1665_vm1, %v1664_v21, %v2496_v24 }
 0x382   : > { %v1697_v13 = vsel %vm1682_vm2, %v1680_v44, %v2500_v18  ;;  %v1698_v32 = vsel %vm1682_vm2, %v1681_v5, %v2501_v3 }
 0x383   : > { %2270 = vmatprep.mubr.f32.mxu1 %v1697_v13 }
 0x384   : > { %2271 = vmatmul.mubr.f32.gmra.mrb[30].mxu1 %v1698_v32 }
 0x3f0   : > { %v2251_v36 = vpop.f32.mrb[16].mxu1 }
 0x3f1   : > { %v1794_v59 = vadd.f32 %v2251_v36, %v2026_v23  ;;  %v1788_v61 = vpop.f32.mrb[17].mxu1 }
 0x3f2   : > { %v1789_v51 = vadd.f32 %v2026_v23, %v1788_v61 }
 0x3f3   : > { %1868 = vst.msk [vmem:[%s3459_s20 + $0x8] sm:$0xff] %vm313_vm0, %v1794_v59 }
 0x3f4   : > { %1867 = vst.msk [vmem:[%s3459_s20] sm:$0xff] %vm313_vm0, %v1789_v51 }
 0x406   : > { %v2254_v17 = vpop.f32.mrb[18].mxu1 }
 0x407   : > { %v1804_v20 = vadd.f32 %v2254_v17, %v2026_v23  ;;  %v1798_v57 = vpop.f32.mrb[19].mxu1 }
 0x408   : > { %v1799_v29 = vadd.f32 %v2026_v23, %v1798_v57 }
 0x409   : > { %1870 = vst.msk [vmem:[%s3459_s20 + $0x18] sm:$0xff] %vm313_vm0, %v1804_v20 }
 0x40a   : > { %1869 = vst.msk [vmem:[%s3459_s20 + $0x10] sm:$0xff] %vm313_vm0, %v1799_v29  ;;  %v2257_v1 = vpop.f32.mrb[20].mxu1 }
 0x40b   : > { %v1814_v43 = vadd.f32 %v2257_v1, %v2026_v23  ;;  %v1808_v27 = vpop.f32.mrb[21].mxu1 }
 0x40c   : > { %v1809_v15 = vadd.f32 %v2026_v23, %v1808_v27 }
 0x40d   : > { %1872 = vst.msk [vmem:[%s3459_s20 + $0x28] sm:$0xff] %vm313_vm0, %v1814_v43 }
 0x40e   : > { %1871 = vst.msk [vmem:[%s3459_s20 + $0x20] sm:$0xff] %vm313_vm0, %v1809_v15 }
 0x412   : > { %v2260_v58 = vpop.f32.mrb[22].mxu1 }
 0x413   : > { %v1824_v26 = vadd.f32 %v2260_v58, %v2026_v23  ;;  %v1818_v37 = vpop.f32.mrb[23].mxu1 }
 0x414   : > { %v1819_v54 = vadd.f32 %v2026_v23, %v1818_v37 }
 0x415   : > { %1874 = vst.msk [vmem:[%s3459_s20 + $0x38] sm:$0xff] %vm313_vm0, %v1824_v26 }
 0x416   : > { %1873 = vst.msk [vmem:[%s3459_s20 + $0x30] sm:$0xff] %vm313_vm0, %v1819_v54 }
 0x421   : > { %v2263_v11 = vpop.f32.mrb[24].mxu1 }
 0x422   : > { %v1834_v9 = vadd.f32 %v2263_v11, %v2026_v23  ;;  %v1828_v30 = vpop.f32.mrb[25].mxu1 }
 0x423   : > { %v1829_v22 = vadd.f32 %v2026_v23, %v1828_v30 }
 0x424   : > { %1876 = vst.msk [vmem:[%s3459_s20 + $0x48] sm:$0xff] %vm313_vm0, %v1834_v9 }
 0x425   : > { %1875 = vst.msk [vmem:[%s3459_s20 + $0x40] sm:$0xff] %vm313_vm0, %v1829_v22 }
 0x431   : > { %v2266_v10 = vpop.f32.mrb[26].mxu1 }
 0x432   : > { %v1844_v35 = vadd.f32 %v2266_v10, %v2026_v23  ;;  %v1838_v42 = vpop.f32.mrb[27].mxu1 }
 0x433   : > { %v1839_v55 = vadd.f32 %v2026_v23, %v1838_v42 }
 0x434   : > { %1878 = vst.msk [vmem:[%s3459_s20 + $0x58] sm:$0xff] %vm313_vm0, %v1844_v35 }
 0x435   : > { %1877 = vst.msk [vmem:[%s3459_s20 + $0x50] sm:$0xff] %vm313_vm0, %v1839_v55 }
 0x444   : > { %v2269_v4 = vpop.f32.mrb[28].mxu1 }
 0x445   : > { %v1854_v47 = vadd.f32 %v2269_v4, %v2026_v23  ;;  %v1848_v62 = vpop.f32.mrb[29].mxu1 }
 0x446   : > { %v1849_v7 = vadd.f32 %v2026_v23, %v1848_v62 }
 0x447   : > { %1880 = vst.msk [vmem:[%s3459_s20 + $0x68] sm:$0xff] %vm313_vm0, %v1854_v47 }
 0x448   : > { %1879 = vst.msk [vmem:[%s3459_s20 + $0x60] sm:$0xff] %vm313_vm0, %v1849_v7 }
 0x457   : > { %v2272_v53 = vpop.f32.mrb[30].mxu1 }
 0x458   : > { %v1864_v28 = vadd.f32 %v2272_v53, %v2026_v23  ;;  %v1858_v38 = vpop.f32.mrb[31].mxu1 }
 0x459   : > { %v1859_v41 = vadd.f32 %v2026_v23, %v1858_v38 }
 0x45a   : > { %1882 = vst.msk [vmem:[%s3459_s20 + $0x78] sm:$0xff] %vm313_vm0, %v1864_v28 }
 0x45b   : > { %1881 = vst.msk [vmem:[%s3459_s20 + $0x70] sm:$0xff] %vm313_vm0, %v1859_v41 }
 0x45c PF: > { %s16_s21 = sadd.s32 1, %s2661_s21  }
 0x45d   : > { %p13_p4 = scmp.ge.s32.totalorder %s16_s21, 4  }
 0x45f   :  { %15 = sbr.rel (!%p13_p4) target bundleno = 1 (0x1), region = 77 }

</bundles_post_ra>
